<compile_context>
chip_gen: v7x
topology: tpu7x:2x2x1
jax: 0.10.0
libtpu: 0.0.40
codegen_flags: <defaults>
</compile_context>

<pallas_src>
import jax
import jax.numpy as jnp
from jax.experimental import pallas as pl
from jax.experimental.pallas import tpu as pltpu


def _round_up(x: int, m: int) -> int:
    return ((x + m - 1) // m) * m


def _cdiv(a: int, b: int) -> int:
    return (a + b - 1) // b


def _vmem_capacity_bytes() -> int:
    """Physical VMEM per TensorCore; conservative fallback if query fails."""
    try:
        cap = getattr(pltpu.get_tpu_info(), "vmem_capacity_bytes", None)
        if cap:
            return int(cap)
    except Exception:
        pass
    return 64 * 1024 * 1024   # v7x per-TC VMEM (smallest of the targets)


def _make_sae_kernel(tile_b: int, b_real: int):
    """tile_b / b_real are Python ints -> baked in as literals (no captured tracers)."""

    def sae_kernel(x_ref, we_ref, be_ref, wd_ref, bd_ref,
                   dec_ref, enc_ref, esum_ref, acc_ref):
        h = pl.program_id(1)

        # Encoder chunk: sigmoid(x @ W_e[:, h] + b_e[h])  (bf16 MXU, f32 acc).
        xb = x_ref[...].astype(we_ref.dtype)
        z = jnp.dot(xb, we_ref[...],
                    preferred_element_type=jnp.float32) + be_ref[...]
        encoded = jax.nn.sigmoid(z)                       # f32 [tile_b, tile_h]
        enc_ref[...] = encoded.astype(enc_ref.dtype)

        # Row-masked partial sum of `encoded` over valid batch rows (for rho_hat).
        # Broadcast to 8 sublanes -> lane-dense unmasked store; wrapper takes row 0.
        row0 = pl.program_id(0) * tile_b
        rows = jax.lax.broadcasted_iota(jnp.int32, (tile_b, 1), 0) + row0
        valid = rows < b_real
        s = jnp.sum(jnp.where(valid, encoded, 0.0), axis=0, keepdims=True)
        esum_ref[...] = jnp.broadcast_to(s, esum_ref.shape)

        # Decoder partial: encoded_chunk @ W_d[h, :]; accumulate over H chunks
        # in an f32 VMEM scratch, add bias at the first chunk, emit at the last.
        part = jnp.dot(encoded.astype(wd_ref.dtype), wd_ref[...],
                       preferred_element_type=jnp.float32)

        @pl.when(h == 0)
        def _():
            acc_ref[...] = part + bd_ref[...]

        @pl.when(h > 0)
        def _():
            acc_ref[...] = acc_ref[...] + part

        @pl.when(h == pl.num_programs(1) - 1)
        def _():
            dec_ref[...] = acc_ref[...].astype(dec_ref.dtype)

    return sae_kernel


def pack_params(w_enc, b_enc, w_dec, b_dec):
    """One-time padding + bf16 cast of the weights (hoisted out of forward)."""
    D, H = w_enc.shape
    Dp, Hp = _round_up(D, 128), _round_up(H, 128)
    bf16, f32 = jnp.bfloat16, jnp.float32
    wep = jnp.zeros((Dp, Hp), bf16).at[:D, :H].set(w_enc.astype(bf16))
    bep = jnp.zeros((1, Hp), f32).at[0, :H].set(b_enc.astype(f32))
    wdp = jnp.zeros((Hp, Dp), bf16).at[:H, :D].set(w_dec.astype(bf16))
    bdp = jnp.zeros((1, Dp), f32).at[0, :D].set(b_dec.astype(f32))
    return {"w_enc": wep, "b_enc": bep, "w_dec": wdp, "b_dec": bdp,
            "input_size": D, "hidden_size": H}


def _choose_tiles(B, Dp, Hp, x_bytes, enc_bytes, dec_bytes,
                  block_b, block_h, budget):
    tile_b = max(8, min(_round_up(B, 8), _round_up(block_b, 8)))
    # Keep both v7x TensorCores busy on the "parallel" batch axis.
    if B > 8 and _cdiv(B, tile_b) < 2:
        tile_b = _round_up(_cdiv(B, 2), 8)

    def fit_h(want):
        th = max(128, min(Hp, _round_up(want, 128)))
        while Hp % th:           # tile_h must divide Hp (no OOB weight columns)
            th -= 128
        return th

    tile_h = Hp if block_h is None else fit_h(block_h)

    def est(tb, th):
        nh = Hp // th
        wbuf = 1 if nh == 1 else 2         # resident weights single-buffered
        weight_bytes = wbuf * (2 * Dp * th + 2 * th * Dp + 4 * th) + 4 * Dp
        act_bytes = (2 * tb * Dp * x_bytes + 2 * tb * th * enc_bytes
                     + 2 * tb * Dp * dec_bytes + 2 * 8 * th * 4)
        return weight_bytes + act_bytes + tb * Dp * 4     # + f32 acc scratch

    while est(tile_b, tile_h) > budget:
        if tile_b > 128:
            tile_b = _round_up(tile_b // 2, 8)
        elif tile_h > 128:
            tile_h = fit_h(tile_h // 2)
        elif tile_b > 8:
            tile_b = _round_up(tile_b // 2, 8)
        else:
            break
    return tile_b, tile_h, est(tile_b, tile_h)


def sae_forward_packed(x, params, sparsity_param=0.05, block_b=512, block_h=None,
                       decoded_dtype=jnp.float32, encoded_dtype=jnp.float32):
    """x: [B, D] f32; params from pack_params.
    Returns (decoded [B, D], kl_div scalar f32, encoded [B, H])."""
    f32 = jnp.float32
    B, D = x.shape
    H = params["hidden_size"]
    assert D == params["input_size"]
    wep, bep, wdp, bdp = (params["w_enc"], params["b_enc"],
                          params["w_dec"], params["b_dec"])
    Dp, Hp = wep.shape

    # No batch padding.  If D is already lane-aligned stream x as f32 and cast
    # in-kernel (saves a wrapper HBM pass); otherwise lane-pad + bf16-cast once.
    if D == Dp:
        xp = x
    else:
        xp = jnp.zeros((B, Dp), jnp.bfloat16).at[:, :D].set(x.astype(jnp.bfloat16))

    cap = _vmem_capacity_bytes()
    tile_b, tile_h, vmem_est = _choose_tiles(
        B, Dp, Hp, jnp.dtype(xp.dtype).itemsize,
        jnp.dtype(encoded_dtype).itemsize, jnp.dtype(decoded_dtype).itemsize,
        block_b, block_h, int(0.8 * cap))
    nb = _cdiv(B, tile_b)
    nh = Hp // tile_h
    resident = nh == 1

    # Always set the scoped VMEM limit (generation-aware), capped below physical.
    vmem_limit = int(min(0.9 * cap, max(1.3 * vmem_est, 32 * 1024 * 1024)))

    flops = 4 * B * Dp * Hp                              # two matmuls
    transcendentals = B * Hp                             # sigmoid -> exp
    bytes_accessed = (xp.size * jnp.dtype(xp.dtype).itemsize
                      + (nb if nh > 1 else 1) * (wep.size + wdp.size) * 2
                      + bep.size * 4 + bdp.size * 4
                      + B * Dp * jnp.dtype(decoded_dtype).itemsize
                      + B * Hp * jnp.dtype(encoded_dtype).itemsize
                      + nb * 8 * Hp * 4)

    kernel = _make_sae_kernel(tile_b, B)

    def _spec(shape, index_map, single_buffer):
        if single_buffer:
            try:
                return pl.BlockSpec(shape, index_map,
                                    pipeline_mode=pl.Buffered(1))
            except Exception:
                pass
        return pl.BlockSpec(shape, index_map)

    def _call(single_buffer):
        in_specs = [
            pl.BlockSpec((tile_b, Dp), lambda i, h: (i, 0)),               # x
            _spec((Dp, tile_h), lambda i, h: (0, h), single_buffer and resident),  # W_e
            _spec((1, tile_h), lambda i, h: (0, h), single_buffer and resident),   # b_e
            _spec((tile_h, Dp), lambda i, h: (h, 0), single_buffer and resident),  # W_d
            _spec((1, Dp), lambda i, h: (0, 0), single_buffer),            # b_d
        ]
        out_specs = (
            pl.BlockSpec((tile_b, Dp), lambda i, h: (i, 0)),               # decoded
            pl.BlockSpec((tile_b, tile_h), lambda i, h: (i, h)),           # encoded
            pl.BlockSpec((8, tile_h), lambda i, h: (i, h)),                # esum
        )
        return pl.pallas_call(
            kernel,
            out_shape=(
                jax.ShapeDtypeStruct((B, Dp), decoded_dtype),
                jax.ShapeDtypeStruct((B, Hp), encoded_dtype),
                jax.ShapeDtypeStruct((nb * 8, Hp), f32),
            ),
            grid=(nb, nh),
            in_specs=in_specs,
            out_specs=out_specs,
            scratch_shapes=[pltpu.VMEM((tile_b, Dp), f32)],
            compiler_params=pltpu.CompilerParams(
                dimension_semantics=("parallel", "arbitrary"),
                vmem_limit_bytes=vmem_limit),
            cost_estimate=pl.CostEstimate(
                flops=flops, transcendentals=transcendentals,
                bytes_accessed=bytes_accessed),
        )(xp, wep, bep, wdp, bdp)

    try:
        dec_pad, enc_pad, esum = _call(True)
    except Exception:
        # Fallback if this Pallas/Mosaic version rejects single-buffering.
        dec_pad, enc_pad, esum = _call(False)

    decoded = dec_pad[:, :D]
    encoded = enc_pad[:, :H]

    # Finalize the KL sparsity penalty (tiny [H] reduction) in the wrapper.
    rho_hat = jnp.sum(esum.reshape(nb, 8, Hp)[:, 0, :H].astype(f32),
                      axis=0) / jnp.float32(B)
    eps = jnp.float32(1e-6)
    rho_hat = jnp.clip(rho_hat, eps, 1.0 - eps)
    rho = jnp.float32(sparsity_param)
    kl_div = jnp.sum(rho * jnp.log(rho / rho_hat)
                     + (1.0 - rho) * jnp.log((1.0 - rho) / (1.0 - rho_hat)))
    # TODO(synk): activation_history / loss_history bookkeeping and the
    # matplotlib analysis methods are host-side state, not kernel work.
    return decoded, kl_div, encoded


def sparse_autoencoder_forward(x, w_enc, b_enc, w_dec, b_dec,
                               sparsity_param=0.05, block_b=512, block_h=None):
    """Convenience wrapper (packs weights per call; prefer pack_params once)."""
    return sae_forward_packed(x, pack_params(w_enc, b_enc, w_dec, b_dec),
                              sparsity_param=sparsity_param,
                              block_b=block_b, block_h=block_h)


def init_params(key, input_size, hidden_size):
    """Deterministic init mirroring nn.Linear's uniform(-1/sqrt(fan_in), ...)."""
    k1, k2, k3, k4 = jax.random.split(key, 4)
    bound_e = 1.0 / jnp.sqrt(jnp.float32(input_size))
    bound_d = 1.0 / jnp.sqrt(jnp.float32(hidden_size))
    # stored pre-transposed as [in, out]
    w_enc = jax.random.uniform(k1, (input_size, hidden_size), jnp.float32,
                               -bound_e, bound_e)
    b_enc = jax.random.uniform(k2, (hidden_size,), jnp.float32,
                               -bound_e, bound_e)
    w_dec = jax.random.uniform(k3, (hidden_size, input_size), jnp.float32,
                               -bound_d, bound_d)
    b_dec = jax.random.uniform(k4, (input_size,), jnp.float32,
                               -bound_d, bound_d)
    return w_enc, b_enc, w_dec, b_dec


def _reference(x, w_enc, b_enc, w_dec, b_dec, rho):
    """Plain-JAX reference mirroring the kernel's bf16-matmul / f32-accumulate path."""
    enc = jax.nn.sigmoid(
        jnp.dot(x.astype(jnp.bfloat16), w_enc.astype(jnp.bfloat16),
                preferred_element_type=jnp.float32) + b_enc)
    dec = jnp.dot(enc.astype(jnp.bfloat16), w_dec.astype(jnp.bfloat16),
                  preferred_element_type=jnp.float32) + b_dec
    rho_hat = enc.mean(axis=0)
    kl = jnp.sum(rho * jnp.log(rho / rho_hat)
                 + (1 - rho) * jnp.log((1 - rho) / (1 - rho_hat)))
    return dec, kl, enc


if __name__ == "__main__":
    SPARSITY = 0.05
    key = jax.random.PRNGKey(0)

    # (B, D, H, block_b, block_h):
    #   case 1: lane-aligned, resident weights, 2 batch tiles
    #   case 2: D/H padding + partial boundary batch tile + nb>=2 heuristic
    #   case 3: forced hidden-dim streaming (nh=2) exercising the accumulator
    cases = [
        (256, 256, 128, 128, None),
        (200, 192, 96, 512, None),
        (128, 128, 256, 64, 128),
    ]

    for B, INPUT_SIZE, HIDDEN_SIZE, BLOCK_B, BLOCK_H in cases:
        k_x, k_p, key = jax.random.split(key, 3)
        x = jax.random.normal(k_x, (B, INPUT_SIZE), jnp.float32)
        w_enc, b_enc, w_dec, b_dec = init_params(k_p, INPUT_SIZE, HIDDEN_SIZE)

        packed = pack_params(w_enc, b_enc, w_dec, b_dec)   # once per param set
        decoded, kl_div, encoded = sae_forward_packed(
            x, packed, sparsity_param=SPARSITY,
            block_b=BLOCK_B, block_h=BLOCK_H)
        jax.block_until_ready((decoded, kl_div, encoded))

        dec_ref, kl_ref, enc_ref = _reference(x, w_enc, b_enc, w_dec, b_dec,
                                              SPARSITY)

        assert decoded.shape == (B, INPUT_SIZE)
        assert encoded.shape == (B, HIDDEN_SIZE)
        assert jnp.allclose(encoded, enc_ref, atol=1e-3, rtol=1e-3), \
            f"encoded mismatch for shape {(B, INPUT_SIZE, HIDDEN_SIZE)}"
        assert jnp.allclose(decoded, dec_ref, atol=2e-3, rtol=2e-3), \
            f"decoded mismatch for shape {(B, INPUT_SIZE, HIDDEN_SIZE)}"
        assert jnp.allclose(kl_div, kl_ref, atol=1e-2, rtol=1e-3), \
            f"kl mismatch for shape {(B, INPUT_SIZE, HIDDEN_SIZE)}"

    print("KERNEL_OK")
</pallas_src>

<mosaic_0001>
module attributes {stable_mosaic.version = 11 : i64} {
  func.func @sae_kernel(%arg0: i32, %arg1: i32, %arg2: memref<128x256xf32, #tpu.memory_space<vmem>>, %arg3: memref<256x128xbf16, #tpu.memory_space<vmem>>, %arg4: memref<1x128xf32, #tpu.memory_space<vmem>>, %arg5: memref<128x256xbf16, #tpu.memory_space<vmem>>, %arg6: memref<1x256xf32, #tpu.memory_space<vmem>>, %arg7: memref<128x256xf32, #tpu.memory_space<vmem>>, %arg8: memref<128x128xf32, #tpu.memory_space<vmem>>, %arg9: memref<8x128xf32, #tpu.memory_space<vmem>>, %arg10: memref<128x256xf32, #tpu.memory_space<vmem>>) attributes {dimension_semantics = [#tpu.dimension_semantics<parallel>, #tpu.dimension_semantics<arbitrary>], iteration_bounds = array<i64: 2, 1>, scalar_prefetch = 0 : i64, scratch_operands = 1 : i64, tpu.core_type = #tpu.core_type<tc>, window_params = [{transform_indices = @transform_0, window_bounds = array<i64: 128, 256>}, {pipeline_mode = #tpu.pipeline_mode<synchronous>, transform_indices = @transform_1, window_bounds = array<i64: 256, 128>}, {pipeline_mode = #tpu.pipeline_mode<synchronous>, transform_indices = @transform_2, window_bounds = array<i64: 1, 128>}, {pipeline_mode = #tpu.pipeline_mode<synchronous>, transform_indices = @transform_3, window_bounds = array<i64: 128, 256>}, {pipeline_mode = #tpu.pipeline_mode<synchronous>, transform_indices = @transform_4, window_bounds = array<i64: 1, 256>}, {transform_indices = @transform_5, window_bounds = array<i64: 128, 256>}, {transform_indices = @transform_6, window_bounds = array<i64: 128, 128>}, {transform_indices = @transform_7, window_bounds = array<i64: 8, 128>}]} {
    %c0 = arith.constant 0 : index
    %c0_0 = arith.constant 0 : index
    %0 = vector.load %arg2[%c0, %c0_0] : memref<128x256xf32, #tpu.memory_space<vmem>>, vector<128x256xf32>
    %1 = arith.truncf %0 : vector<128x256xf32> to vector<128x256xbf16>
    %c0_1 = arith.constant 0 : index
    %c0_2 = arith.constant 0 : index
    %2 = vector.load %arg3[%c0_1, %c0_2] : memref<256x128xbf16, #tpu.memory_space<vmem>>, vector<256x128xbf16>
    %cst = arith.constant dense<0.000000e+00> : vector<128x128xf32>
    %3 = tpu.matmul %1, %2, %cst {dimension_numbers = #tpu.dot_dimension_numbers<[1], [0], [0], [1], [0, 0, 1, 1], [], []>} : vector<128x256xbf16>, vector<256x128xbf16>, vector<128x128xf32> -> vector<128x128xf32>
    %c0_3 = arith.constant 0 : index
    %c0_4 = arith.constant 0 : index
    %4 = vector.load %arg4[%c0_3, %c0_4] : memref<1x128xf32, #tpu.memory_space<vmem>>, vector<1x128xf32>
    %5 = vector.broadcast %4 : vector<1x128xf32> to vector<128x128xf32>
    %6 = arith.addf %3, %5 : vector<128x128xf32>
    %7 = arith.negf %6 : vector<128x128xf32>
    %8 = math.exp %7 : vector<128x128xf32>
    %cst_5 = arith.constant 1.000000e+00 : f32
    %9 = vector.broadcast %cst_5 : f32 to vector<128x128xf32>
    %10 = arith.addf %9, %8 : vector<128x128xf32>
    %11 = arith.divf %9, %10 : vector<128x128xf32>
    %c0_6 = arith.constant 0 : index
    %c0_7 = arith.constant 0 : index
    %12 = vector.load %arg8[%c0_6, %c0_7] : memref<128x128xf32, #tpu.memory_space<vmem>>, vector<128x128xf32>
    tpu.vector_store %arg8[%c0_6, %c0_7], %11 {strides = array<i32>} : memref<128x128xf32, #tpu.memory_space<vmem>>, vector<128x128xf32>,
    %c128_i32 = arith.constant 128 : i32
    %13 = arith.muli %arg0, %c128_i32 : i32
    %14 = tpu.iota {dimensions = array<i32: 0>} : vector<128x1xi32>
    %15 = vector.broadcast %13 : i32 to vector<128x1xi32>
    %16 = arith.addi %14, %15 : vector<128x1xi32>
    %c256_i32 = arith.constant 256 : i32
    %17 = vector.broadcast %c256_i32 : i32 to vector<128x1xi32>
    %18 = arith.cmpi slt, %16, %17 : vector<128x1xi32>
    %cst_8 = arith.constant 0.000000e+00 : f32
    %19 = vector.shape_cast %18 : vector<128x1xi1> to vector<128x1xi1>
    %20 = vector.broadcast %19 : vector<128x1xi1> to vector<128x128xi1>
    %21 = vector.broadcast %cst_8 : f32 to vector<128x128xf32>
    %22 = arith.select %20, %11, %21 : vector<128x128xi1>, vector<128x128xf32>
    %cst_9 = arith.constant dense<0.000000e+00> : vector<128xf32>
    %23 = vector.multi_reduction <add>, %22, %cst_9 [0] : vector<128x128xf32> to vector<128xf32>
    %24 = vector.shape_cast %23 : vector<128xf32> to vector<1x128xf32>
    %25 = vector.shape_cast %24 : vector<1x128xf32> to vector<1x128xf32>
    %26 = vector.broadcast %25 : vector<1x128xf32> to vector<8x128xf32>
    %c0_10 = arith.constant 0 : index
    %c0_11 = arith.constant 0 : index
    %27 = vector.load %arg9[%c0_10, %c0_11] : memref<8x128xf32, #tpu.memory_space<vmem>>, vector<8x128xf32>
    tpu.vector_store %arg9[%c0_10, %c0_11], %26 {strides = array<i32>} : memref<8x128xf32, #tpu.memory_space<vmem>>, vector<8x128xf32>,
    %28 = arith.truncf %11 : vector<128x128xf32> to vector<128x128xbf16>
    %c0_12 = arith.constant 0 : index
    %c0_13 = arith.constant 0 : index
    %29 = vector.load %arg5[%c0_12, %c0_13] : memref<128x256xbf16, #tpu.memory_space<vmem>>, vector<128x256xbf16>
    %cst_14 = arith.constant dense<0.000000e+00> : vector<128x256xf32>
    %30 = tpu.matmul %28, %29, %cst_14 {dimension_numbers = #tpu.dot_dimension_numbers<[1], [0], [0], [1], [0, 0, 1, 1], [], []>} : vector<128x128xbf16>, vector<128x256xbf16>, vector<128x256xf32> -> vector<128x256xf32>
    %c0_i32 = arith.constant 0 : i32
    %31 = arith.cmpi eq, %arg1, %c0_i32 : i32
    %32 = arith.extui %31 : i1 to i32
    %c0_i32_15 = arith.constant 0 : i32
    %33 = arith.cmpi ne, %32, %c0_i32_15 : i32
    scf.if %33 {
      %c0_20 = arith.constant 0 : index
      %c0_21 = arith.constant 0 : index
      %40 = vector.load %arg6[%c0_20, %c0_21] : memref<1x256xf32, #tpu.memory_space<vmem>>, vector<1x256xf32>
      %41 = vector.broadcast %40 : vector<1x256xf32> to vector<128x256xf32>
      %42 = arith.addf %30, %41 : vector<128x256xf32>
      %c0_22 = arith.constant 0 : index
      %c0_23 = arith.constant 0 : index
      %43 = vector.load %arg10[%c0_22, %c0_23] : memref<128x256xf32, #tpu.memory_space<vmem>>, vector<128x256xf32>
      tpu.vector_store %arg10[%c0_22, %c0_23], %42 {strides = array<i32>} : memref<128x256xf32, #tpu.memory_space<vmem>>, vector<128x256xf32>,
    } else {
    }
    %c0_i32_16 = arith.constant 0 : i32
    %34 = arith.cmpi sgt, %arg1, %c0_i32_16 : i32
    %35 = arith.extui %34 : i1 to i32
    %c0_i32_17 = arith.constant 0 : i32
    %36 = arith.cmpi ne, %35, %c0_i32_17 : i32
    scf.if %36 {
      %c0_20 = arith.constant 0 : index
      %c0_21 = arith.constant 0 : index
      %40 = vector.load %arg10[%c0_20, %c0_21] : memref<128x256xf32, #tpu.memory_space<vmem>>, vector<128x256xf32>
      %41 = arith.addf %40, %30 : vector<128x256xf32>
      %c0_22 = arith.constant 0 : index
      %c0_23 = arith.constant 0 : index
      %42 = vector.load %arg10[%c0_22, %c0_23] : memref<128x256xf32, #tpu.memory_space<vmem>>, vector<128x256xf32>
      tpu.vector_store %arg10[%c0_22, %c0_23], %41 {strides = array<i32>} : memref<128x256xf32, #tpu.memory_space<vmem>>, vector<128x256xf32>,
    } else {
    }
    %c0_i32_18 = arith.constant 0 : i32
    %37 = arith.cmpi eq, %arg1, %c0_i32_18 : i32
    %38 = arith.extui %37 : i1 to i32
    %c0_i32_19 = arith.constant 0 : i32
    %39 = arith.cmpi ne, %38, %c0_i32_19 : i32
    scf.if %39 {
      %c0_20 = arith.constant 0 : index
      %c0_21 = arith.constant 0 : index
      %40 = vector.load %arg10[%c0_20, %c0_21] : memref<128x256xf32, #tpu.memory_space<vmem>>, vector<128x256xf32>
      %c0_22 = arith.constant 0 : index
      %c0_23 = arith.constant 0 : index
      %41 = vector.load %arg7[%c0_22, %c0_23] : memref<128x256xf32, #tpu.memory_space<vmem>>, vector<128x256xf32>
      tpu.vector_store %arg7[%c0_22, %c0_23], %40 {strides = array<i32>} : memref<128x256xf32, #tpu.memory_space<vmem>>, vector<128x256xf32>,
    } else {
    }
    return
  }
  func.func @transform_0(%arg0: i32, %arg1: i32) -> (i32, i32) {
    %c0_i32 = arith.constant 0 : i32
    %c0_i32_0 = arith.constant 0 : i32
    return %arg0, %c0_i32 : i32, i32
  }
  func.func @transform_1(%arg0: i32, %arg1: i32) -> (i32, i32) {
    %c0_i32 = arith.constant 0 : i32
    %c0_i32_0 = arith.constant 0 : i32
    return %c0_i32, %arg1 : i32, i32
  }
  func.func @transform_2(%arg0: i32, %arg1: i32) -> (i32, i32) {
    %c0_i32 = arith.constant 0 : i32
    %c0_i32_0 = arith.constant 0 : i32
    return %c0_i32, %arg1 : i32, i32
  }
  func.func @transform_3(%arg0: i32, %arg1: i32) -> (i32, i32) {
    %c0_i32 = arith.constant 0 : i32
    %c0_i32_0 = arith.constant 0 : i32
    return %arg1, %c0_i32 : i32, i32
  }
  func.func @transform_4(%arg0: i32, %arg1: i32) -> (i32, i32) {
    %c0_i32 = arith.constant 0 : i32
    %c0_i32_0 = arith.constant 0 : i32
    %c0_i32_1 = arith.constant 0 : i32
    return %c0_i32, %c0_i32_0 : i32, i32
  }
  func.func @transform_5(%arg0: i32, %arg1: i32) -> (i32, i32) {
    %c0_i32 = arith.constant 0 : i32
    %c0_i32_0 = arith.constant 0 : i32
    return %arg0, %c0_i32 : i32, i32
  }
  func.func @transform_6(%arg0: i32, %arg1: i32) -> (i32, i32) {
    %c0_i32 = arith.constant 0 : i32
    return %arg0, %arg1 : i32, i32
  }
  func.func @transform_7(%arg0: i32, %arg1: i32) -> (i32, i32) {
    %c0_i32 = arith.constant 0 : i32
    return %arg0, %arg1 : i32, i32
  }
}

module attributes {stable_mosaic.version = 11 : i64} {
  func.func @sae_kernel(%arg0: i32, %arg1: i32, %arg2: memref<128x256xf32, #tpu.memory_space<vmem>>, %arg3: memref<256x128xbf16, #tpu.memory_space<vmem>>, %arg4: memref<1x128xf32, #tpu.memory_space<vmem>>, %arg5: memref<128x256xbf16, #tpu.memory_space<vmem>>, %arg6: memref<1x256xf32, #tpu.memory_space<vmem>>, %arg7: memref<128x256xf32, #tpu.memory_space<vmem>>, %arg8: memref<128x128xf32, #tpu.memory_space<vmem>>, %arg9: memref<8x128xf32, #tpu.memory_space<vmem>>, %arg10: memref<128x256xf32, #tpu.memory_space<vmem>>) attributes {dimension_semantics = [#tpu.dimension_semantics<parallel>, #tpu.dimension_semantics<arbitrary>], iteration_bounds = array<i64: 2, 1>, scalar_prefetch = 0 : i64, scratch_operands = 1 : i64, tpu.core_type = #tpu.core_type<tc>, window_params = [{transform_indices = @transform_0, window_bounds = array<i64: 128, 256>}, {transform_indices = @transform_1, window_bounds = array<i64: 256, 128>}, {transform_indices = @transform_2, window_bounds = array<i64: 1, 128>}, {transform_indices = @transform_3, window_bounds = array<i64: 128, 256>}, {pipeline_mode = #tpu.pipeline_mode<synchronous>, transform_indices = @transform_4, window_bounds = array<i64: 1, 256>}, {transform_indices = @transform_5, window_bounds = array<i64: 128, 256>}, {transform_indices = @transform_6, window_bounds = array<i64: 128, 128>}, {transform_indices = @transform_7, window_bounds = array<i64: 8, 128>}]} {
    %c0 = arith.constant 0 : index
    %c0_0 = arith.constant 0 : index
    %0 = vector.load %arg2[%c0, %c0_0] : memref<128x256xf32, #tpu.memory_space<vmem>>, vector<128x256xf32>
    %1 = arith.truncf %0 : vector<128x256xf32> to vector<128x256xbf16>
    %c0_1 = arith.constant 0 : index
    %c0_2 = arith.constant 0 : index
    %2 = vector.load %arg3[%c0_1, %c0_2] : memref<256x128xbf16, #tpu.memory_space<vmem>>, vector<256x128xbf16>
    %cst = arith.constant dense<0.000000e+00> : vector<128x128xf32>
    %3 = tpu.matmul %1, %2, %cst {dimension_numbers = #tpu.dot_dimension_numbers<[1], [0], [0], [1], [0, 0, 1, 1], [], []>} : vector<128x256xbf16>, vector<256x128xbf16>, vector<128x128xf32> -> vector<128x128xf32>
    %c0_3 = arith.constant 0 : index
    %c0_4 = arith.constant 0 : index
    %4 = vector.load %arg4[%c0_3, %c0_4] : memref<1x128xf32, #tpu.memory_space<vmem>>, vector<1x128xf32>
    %5 = vector.broadcast %4 : vector<1x128xf32> to vector<128x128xf32>
    %6 = arith.addf %3, %5 : vector<128x128xf32>
    %7 = arith.negf %6 : vector<128x128xf32>
    %8 = math.exp %7 : vector<128x128xf32>
    %cst_5 = arith.constant 1.000000e+00 : f32
    %9 = vector.broadcast %cst_5 : f32 to vector<128x128xf32>
    %10 = arith.addf %9, %8 : vector<128x128xf32>
    %11 = arith.divf %9, %10 : vector<128x128xf32>
    %c0_6 = arith.constant 0 : index
    %c0_7 = arith.constant 0 : index
    %12 = vector.load %arg8[%c0_6, %c0_7] : memref<128x128xf32, #tpu.memory_space<vmem>>, vector<128x128xf32>
    tpu.vector_store %arg8[%c0_6, %c0_7], %11 {strides = array<i32>} : memref<128x128xf32, #tpu.memory_space<vmem>>, vector<128x128xf32>,
    %c128_i32 = arith.constant 128 : i32
    %13 = arith.muli %arg0, %c128_i32 : i32
    %14 = tpu.iota {dimensions = array<i32: 0>} : vector<128x1xi32>
    %15 = vector.broadcast %13 : i32 to vector<128x1xi32>
    %16 = arith.addi %14, %15 : vector<128x1xi32>
    %c256_i32 = arith.constant 256 : i32
    %17 = vector.broadcast %c256_i32 : i32 to vector<128x1xi32>
    %18 = arith.cmpi slt, %16, %17 : vector<128x1xi32>
    %cst_8 = arith.constant 0.000000e+00 : f32
    %19 = vector.shape_cast %18 : vector<128x1xi1> to vector<128x1xi1>
    %20 = vector.broadcast %19 : vector<128x1xi1> to vector<128x128xi1>
    %21 = vector.broadcast %cst_8 : f32 to vector<128x128xf32>
    %22 = arith.select %20, %11, %21 : vector<128x128xi1>, vector<128x128xf32>
    %cst_9 = arith.constant dense<0.000000e+00> : vector<128xf32>
    %23 = vector.multi_reduction <add>, %22, %cst_9 [0] : vector<128x128xf32> to vector<128xf32>
    %24 = vector.shape_cast %23 : vector<128xf32> to vector<1x128xf32>
    %25 = vector.shape_cast %24 : vector<1x128xf32> to vector<1x128xf32>
    %26 = vector.broadcast %25 : vector<1x128xf32> to vector<8x128xf32>
    %c0_10 = arith.constant 0 : index
    %c0_11 = arith.constant 0 : index
    %27 = vector.load %arg9[%c0_10, %c0_11] : memref<8x128xf32, #tpu.memory_space<vmem>>, vector<8x128xf32>
    tpu.vector_store %arg9[%c0_10, %c0_11], %26 {strides = array<i32>} : memref<8x128xf32, #tpu.memory_space<vmem>>, vector<8x128xf32>,
    %28 = arith.truncf %11 : vector<128x128xf32> to vector<128x128xbf16>
    %c0_12 = arith.constant 0 : index
    %c0_13 = arith.constant 0 : index
    %29 = vector.load %arg5[%c0_12, %c0_13] : memref<128x256xbf16, #tpu.memory_space<vmem>>, vector<128x256xbf16>
    %cst_14 = arith.constant dense<0.000000e+00> : vector<128x256xf32>
    %30 = tpu.matmul %28, %29, %cst_14 {dimension_numbers = #tpu.dot_dimension_numbers<[1], [0], [0], [1], [0, 0, 1, 1], [], []>} : vector<128x128xbf16>, vector<128x256xbf16>, vector<128x256xf32> -> vector<128x256xf32>
    %c0_i32 = arith.constant 0 : i32
    %31 = arith.cmpi eq, %arg1, %c0_i32 : i32
    %32 = arith.extui %31 : i1 to i32
    %c0_i32_15 = arith.constant 0 : i32
    %33 = arith.cmpi ne, %32, %c0_i32_15 : i32
    scf.if %33 {
      %c0_20 = arith.constant 0 : index
      %c0_21 = arith.constant 0 : index
      %40 = vector.load %arg6[%c0_20, %c0_21] : memref<1x256xf32, #tpu.memory_space<vmem>>, vector<1x256xf32>
      %41 = vector.broadcast %40 : vector<1x256xf32> to vector<128x256xf32>
      %42 = arith.addf %30, %41 : vector<128x256xf32>
      %c0_22 = arith.constant 0 : index
      %c0_23 = arith.constant 0 : index
      %43 = vector.load %arg10[%c0_22, %c0_23] : memref<128x256xf32, #tpu.memory_space<vmem>>, vector<128x256xf32>
      tpu.vector_store %arg10[%c0_22, %c0_23], %42 {strides = array<i32>} : memref<128x256xf32, #tpu.memory_space<vmem>>, vector<128x256xf32>,
    } else {
    }
    %c0_i32_16 = arith.constant 0 : i32
    %34 = arith.cmpi sgt, %arg1, %c0_i32_16 : i32
    %35 = arith.extui %34 : i1 to i32
    %c0_i32_17 = arith.constant 0 : i32
    %36 = arith.cmpi ne, %35, %c0_i32_17 : i32
    scf.if %36 {
      %c0_20 = arith.constant 0 : index
      %c0_21 = arith.constant 0 : index
      %40 = vector.load %arg10[%c0_20, %c0_21] : memref<128x256xf32, #tpu.memory_space<vmem>>, vector<128x256xf32>
      %41 = arith.addf %40, %30 : vector<128x256xf32>
      %c0_22 = arith.constant 0 : index
      %c0_23 = arith.constant 0 : index
      %42 = vector.load %arg10[%c0_22, %c0_23] : memref<128x256xf32, #tpu.memory_space<vmem>>, vector<128x256xf32>
      tpu.vector_store %arg10[%c0_22, %c0_23], %41 {strides = array<i32>} : memref<128x256xf32, #tpu.memory_space<vmem>>, vector<128x256xf32>,
    } else {
    }
    %c0_i32_18 = arith.constant 0 : i32
    %37 = arith.cmpi eq, %arg1, %c0_i32_18 : i32
    %38 = arith.extui %37 : i1 to i32
    %c0_i32_19 = arith.constant 0 : i32
    %39 = arith.cmpi ne, %38, %c0_i32_19 : i32
    scf.if %39 {
      %c0_20 = arith.constant 0 : index
      %c0_21 = arith.constant 0 : index
      %40 = vector.load %arg10[%c0_20, %c0_21] : memref<128x256xf32, #tpu.memory_space<vmem>>, vector<128x256xf32>
      %c0_22 = arith.constant 0 : index
      %c0_23 = arith.constant 0 : index
      %41 = vector.load %arg7[%c0_22, %c0_23] : memref<128x256xf32, #tpu.memory_space<vmem>>, vector<128x256xf32>
      tpu.vector_store %arg7[%c0_22, %c0_23], %40 {strides = array<i32>} : memref<128x256xf32, #tpu.memory_space<vmem>>, vector<128x256xf32>,
    } else {
    }
    return
  }
  func.func @transform_0(%arg0: i32, %arg1: i32) -> (i32, i32) {
    %c0_i32 = arith.constant 0 : i32
    %c0_i32_0 = arith.constant 0 : i32
    return %arg0, %c0_i32 : i32, i32
  }
  func.func @transform_1(%arg0: i32, %arg1: i32) -> (i32, i32) {
    %c0_i32 = arith.constant 0 : i32
    %c0_i32_0 = arith.constant 0 : i32
    return %c0_i32, %arg1 : i32, i32
  }
  func.func @transform_2(%arg0: i32, %arg1: i32) -> (i32, i32) {
    %c0_i32 = arith.constant 0 : i32
    %c0_i32_0 = arith.constant 0 : i32
    return %c0_i32, %arg1 : i32, i32
  }
  func.func @transform_3(%arg0: i32, %arg1: i32) -> (i32, i32) {
    %c0_i32 = arith.constant 0 : i32
    %c0_i32_0 = arith.constant 0 : i32
    return %arg1, %c0_i32 : i32, i32
  }
  func.func @transform_4(%arg0: i32, %arg1: i32) -> (i32, i32) {
    %c0_i32 = arith.constant 0 : i32
    %c0_i32_0 = arith.constant 0 : i32
    %c0_i32_1 = arith.constant 0 : i32
    return %c0_i32, %c0_i32_0 : i32, i32
  }
  func.func @transform_5(%arg0: i32, %arg1: i32) -> (i32, i32) {
    %c0_i32 = arith.constant 0 : i32
    %c0_i32_0 = arith.constant 0 : i32
    return %arg0, %c0_i32 : i32, i32
  }
  func.func @transform_6(%arg0: i32, %arg1: i32) -> (i32, i32) {
    %c0_i32 = arith.constant 0 : i32
    return %arg0, %arg1 : i32, i32
  }
  func.func @transform_7(%arg0: i32, %arg1: i32) -> (i32, i32) {
    %c0_i32 = arith.constant 0 : i32
    return %arg0, %arg1 : i32, i32
  }
}

</mosaic_0001>

<bundles_post_ra>
// kernel: tpu_custom_call.1
= control target key start
LH: loop header
LB: loop body
LE: loop exit
PB: predicated region body
PF: predicated region fallthrough
CT: control target
= control target key end

     0   :  { %s2780_s0 = inlined_call_operand.hbm [shape: f32[256,256], index: 0, kind: input, shape index: {}]   ;;  %s2781_s1 = inlined_call_operand.hbm [shape: bf16[256,128], index: 1, kind: input, shape index: {}]   ;;  %s2782_s2 = inlined_call_operand.vmem [shape: f32[1,128], index: 2, kind: input, shape index: {}]   ;;  %s2783_s3 = inlined_call_operand.hbm [shape: bf16[128,256], index: 3, kind: input, shape index: {}]   ;;  %s2784_s4 = inlined_call_operand.vmem [shape: f32[1,256], index: 4, kind: input, shape index: {}]   ;;  %s2785_s5 = inlined_call_operand.hbm [shape: f32[256,256], index: 5, kind: output, shape index: {0}]   ;;  %s2786_s6 = inlined_call_operand.hbm [shape: f32[256,128], index: 6, kind: output, shape index: {1}]   ;;  %s2787_s7 = inlined_call_operand.hbm [shape: f32[16,128], index: 7, kind: output, shape index: {2}]  }
   0x1   :  { %2795 = sst [smem:[#allocation18_spill]] %s2780_s0 }
   0x2   :  { %2796 = sst [smem:[#allocation19_spill]] %s2781_s1 }
   0x3   :  { %13 = vsyncpa [#allocation4], 0 }
   0x4   :  { %15 = vsyncpa [#allocation4 + $0x1], 0 }
   0x5   :  { %16 = vsyncpa [#allocation7], 0 }
   0x6   :  { %17 = vsyncpa [#allocation5], 0 }
   0x7   :  { %19 = vsyncpa [#allocation5 + $0x1], 0 }
   0x8   :  { %20 = vsyncpa [#allocation11], 0 }
   0x9   :  { %22 = vsyncpa [#allocation11 + $0x1], 0  ;;  %s2256_s24 = smov 0   ;;  %s2258_s25 = smov 0  }
   0xa   :  { %s2260_s26 = smov 0   ;;  %s2262_s27 = smov 0  }
   0xb   :  { %s2264_s28 = smov 0   ;;  %s2266_s29 = smov 0  }
   0xc LB: > { %s2287_s30 = sadd.s32 4294967295, %s2197_s29   ;;  %s2789_s8 = sadd.s32 4294967294, %s2197_s29   ;;  %s2197_s29 = sphi %s2266_s29, %s28_s29   ;;  %s2193_s28 = sphi %s2264_s28, %s2821_s28   ;;  %s2189_s27 = sphi %s2262_s27, %s2820_s27   ;;  %s2185_s26 = sphi %s2260_s26, %s2819_s26   ;;  %s2181_s25 = sphi %s2258_s25, %s2818_s25   ;;  %s2177_s24 = sphi %s2256_s24, %s2817_s24  }
   0xd   : > { %p60_p0 = scmp.ne.s32.totalorder %s2181_s25, %s2177_s24  ;;  %p2788_p1 = scmp.eq.s32.totalorder %s2287_s30, 0 }
   0xe   : > { %p189_p3 = scmp.eq.s32.totalorder %s2789_s8, 1  ;;  %p1611_p5 = scmp.ge.s32.totalorder %s2197_s29, 1 }
   0xf   : > { %p2298_p4 = por %p2788_p1, %p60_p0  ;;  %p252_p7 = scmp.lt.s32.totalorder %s2197_s29, 3 }
  0x10   : > { %p2303_p6 = por %p189_p3, %p60_p0  ;;  %s2199_s12 = smov [#allocation6]  }
  0x11   : > { %s2797_s9 = scalar_select %p2298_p4, 1, 0 }
  0x12   : > { %s2798_s10 = scalar_select %p2303_p6, 1, 0 }
  0x13   : > { %p2308_p8 = pnand %p1611_p5, %p252_p7  ;;  %s266_s13 = sshll.u32 %s2199_s12, 4  ;;  %s2312_s13 = int_to_ptr.vmem [resolvable:$true] %s266_s13 }
  0x14   : > { %2799 = sst [smem:[#allocation17_spill]] %s2798_s10  ;;  %s2200_s15 = smov [#allocation8]  }
  0x15   : > { %p1773_p9 = pneg %p2308_p8  ;;  %s289_s16 = sshll.u32 %s2200_s15, 4  ;;  %s2323_s16 = int_to_ptr.vmem [resolvable:$true] %s289_s16 }
  0x16   : > { %s2802_s1 = sld [smem:[#allocation19_spill]] }
  0x17   : > { %p2319_p11 = pnand %p1773_p9, %p2788_p1 }
  0x19   : > { %p1967_p13 = pneg %p2319_p11 }
  0x1c   : > { %s1965_s19 = scalar_lea.hbm %s2802_s1, 2048 }
  0x1d   : > { %p1966_p12 = scmp.ne.s32.totalorder %s2802_s1, %s1965_s19  ;;  %p1972_p5 = scmp.lt.u32.totalorder %s1965_s19, %s2802_s1 }
  0x1f   : > { %p1968_p0 = pnand %p1967_p13, %p1966_p12 }
  0x21   : > { %p1969_p3 = pneg %p1968_p0 }
  0x23   : > { %p1974_p7 = pnand %p1972_p5, %p1969_p3 }
  0x25   : > { %1977 = shalt.err (!%p1974_p7)
}
  0x26   : > { %s1978_s12 = scalar_lea.vmem %s2312_s13, 2048  ;;  %p1986_p2 = scmp.lt.s32.totalorder %s2312_s13, %s2312_s13 }
  0x27   : > { %p1979_p9 = scmp.ne.s32.totalorder %s2312_s13, %s1978_s12  ;;  %p1987_p12 = scmp.lt.s32.totalorder %s1978_s12, %s1978_s12 }
  0x29   : > { %p1981_p10 = pnand %p1979_p9, %p1967_p13  ;;  %p1988_p0 = por %p1987_p12, %p1986_p2 }
  0x2b   : > { %p1982_p1 = pneg %p1981_p10 }
  0x2d   : > { %p1989_p6 = pnand %p1988_p0, %p1982_p1 }
  0x2f   : > { %1992 = shalt.err (!%p1989_p6)
}
  0x30   : > { %s2201_s15 = smov 64   ;;  %s2202_s17 = smov 4  }
  0x31   : > { %1776 = dma.hbm_to_vmem [thread:$0]  (!%p2319_p11), %s2802_s1, 2048, %s2312_s13, [#allocation7], %s2201_s15, %s2201_s15, %s2202_s17  }
  0x32   : > { %s1993_s22 = scalar_lea.hbm %s2783_s3, 2048 }
  0x33   : > { %p1994_p2 = scmp.ne.s32.totalorder %s2783_s3, %s1993_s22  ;;  %p2000_p10 = scmp.lt.u32.totalorder %s1993_s22, %s2783_s3 }
  0x35   : > { %p1996_p1 = pnand %p1994_p2, %p1967_p13 }
  0x37   : > { %p1997_p6 = pneg %p1996_p1 }
  0x39   : > { %p2002_p3 = pnand %p2000_p10, %p1997_p6 }
  0x3b   : > { %2005 = shalt.err (!%p2002_p3)
}
  0x3c   : > { %s2006_s13 = scalar_lea.vmem %s2323_s16, 2048  ;;  %p2014_p12 = scmp.lt.s32.totalorder %s2323_s16, %s2323_s16 }
  0x3d   : > { %p2007_p5 = scmp.ne.s32.totalorder %s2323_s16, %s2006_s13  ;;  %p2015_p0 = scmp.lt.s32.totalorder %s2006_s13, %s2006_s13 }
  0x3f   : > { %p2009_p7 = pnand %p2007_p5, %p1967_p13  ;;  %p2016_p2 = por %p2015_p0, %p2014_p12 }
  0x41   : > { %p2010_p9 = pneg %p2009_p7 }
  0x43   : > { %p2017_p1 = pnand %p2016_p2, %p2010_p9 }
  0x45   : > { %2020 = shalt.err (!%p2017_p1)
}
  0x46   : > { %s2203_s8 = smov 128   ;;  %s2204_s10 = smov 8  }
  0x47   : > { %1779 = dma.hbm_to_vmem [thread:$0]  (!%p2319_p11), %s2783_s3, 2048, %s2323_s16, [#allocation7], %s2203_s8, %s2203_s8, %s2204_s10  }
  0x48   : > { %s40_s18 = sadd.s32 1, %s2193_s28  ;;  %s47_s19 = sadd.s32 1, %s2185_s26 }
  0x49   : > { %p42_p13 = scmp.ge.s32.totalorder %s40_s18, 2  ;;  %p54_p6 = scmp.ne.s32.totalorder %s2185_s26, %s2181_s25 }
  0x4a   : > { %p55_p10 = scmp.eq.s32.totalorder %s2197_s29, 0  ;;  %p1796_p3 = scmp.lt.s32.totalorder %s2197_s29, 2 }
  0x4b   : > { %s2823_s18 = smov (%p42_p13, %s40_s18), 0  ;;  %p2803_p7 = scmp.eq.s32.totalorder %s2287_s30, 1 }
  0x4c   : > { %p56_p5 = por %p55_p10, %p54_p6  ;;  %s44_s14 = ssub.s32 %s2193_s28, %s2823_s18 }
  0x4d   : > { %p2387_p9 = por %p2803_p7, %p54_p6  ;;  %s306_s21 = sand.u32 1, %s2185_s26  }
  0x4e   : > { %p45_p12 = scmp.eq.s32.totalorder %s44_s14, 0  ;;  %s1616_s16 = sshll.u32 %s306_s21, 8 }
  0x4f   : > { %s2804_s20 = scalar_select %p2387_p9, 1, 0 }
  0x50   : > { %s1689_s22 = sshll.u32 %s2193_s28, 12  ;;  %s2805_s0 = sld [smem:[#allocation18_spill]] }
  0x51   : > { %s2396_s23 = scalar_select %p45_p12, %s2185_s26, %s47_s19  }
  0x52   : > { %s310_s10 = scalar_lea.vmem [#allocation3], %s1616_s16  ;;  %p2405_p11 = pnand %p1796_p3, %p56_p5 }
  0x53   : > { %s318_s15 = sshll.u32 %s310_s10, 4  ;;  %s2411_s19 = scalar_lea.sflag [#allocation4], %s306_s21  ;;  %s2409_s15 = int_to_ptr.vmem [resolvable:$true] %s318_s15 }
  0x54   : > { %p2023_p2 = pneg %p2405_p11 }
  0x56   : > { %s2401_s8 = scalar_lea.hbm %s2805_s0, %s1689_s22  ;;  %s2026_s12 = scalar_lea.hbm %s2805_s0, 8192 }
  0x57   : > { %s2021_s14 = scalar_lea.hbm %s2401_s8, 4096  ;;  %p2027_p6 = scmp.lt.u32.totalorder %s2401_s8, %s2805_s0 }
  0x58   : > { %p2022_p0 = scmp.ne.s32.totalorder %s2401_s8, %s2021_s14  ;;  %p2028_p10 = scmp.lt.u32.totalorder %s2026_s12, %s2021_s14 }
  0x59   : > { %p2030_p5 = scmp.lt.u32.totalorder %s2021_s14, %s2401_s8 }
  0x5a   : > { %p2024_p1 = pnand %p2023_p2, %p2022_p0  ;;  %p2029_p3 = por %p2028_p10, %p2027_p6 }
  0x5c   : > { %p2025_p13 = pneg %p2024_p1  ;;  %p2031_p7 = por %p2030_p5, %p2029_p3 }
  0x5e   : > { %p2032_p12 = pnand %p2031_p7, %p2025_p13 }
  0x60   : > { %2035 = shalt.err (!%p2032_p12)
}
  0x61   : > { %s2036_s21 = scalar_lea.vmem %s2409_s15, 4096  ;;  %s2205_s16 = smov [#allocation3]  }
  0x62   : > { %p2037_p0 = scmp.ne.s32.totalorder %s2409_s15, %s2036_s21  ;;  %s2041_s22 = sshll.u32 %s2205_s16, 4  ;;  %s2042_s22 = int_to_ptr.vmem [resolvable:$false] %s2041_s22 }
  0x63   : > { %s2043_s13 = scalar_lea.vmem %s2042_s22, 8192  ;;  %p2044_p4 = scmp.lt.s32.totalorder %s2409_s15, %s2042_s22 }
  0x64   : > { %p2039_p1 = pnand %p2037_p0, %p2023_p2  ;;  %p2045_p6 = scmp.lt.s32.totalorder %s2043_s13, %s2036_s21 }
  0x66   : > { %p2040_p9 = pneg %p2039_p1  ;;  %p2046_p10 = por %p2045_p6, %p2044_p4 }
  0x68   : > { %p2047_p3 = pnand %p2046_p10, %p2040_p9 }
  0x6a   : > { %2050 = shalt.err (!%p2047_p3)
}
  0x6b   : > { %s2206_s14 = smov 256   ;;  %s2207_s12 = smov 16  }
  0x6c   : > { %1783 = dma.hbm_to_vmem [thread:$0]  (!%p2405_p11), %s2401_s8, 4096, %s2409_s15, %s2411_s19, %s2206_s14, %s2206_s14, %s2207_s12  }
  0x6d   : > { %330 = sbr.rel (%p2308_p8) target bundleno = 688 (0x2b0), region = 40  ;;  %s2442_s10 = sand.u32 (!%p2308_p8), 1, %s2181_s25  }
  0x6e   : > { %s2793_s21 = sshll.u32 (!%p2308_p8), %s2442_s10, 8  ;;  %s333_s16 = scalar_lea.sflag (!%p2308_p8), [#allocation4], %s2442_s10 }
  0x6f   : > { %s2448_s22 = scalar_lea.vmem (!%p2308_p8), [#allocation3], %s2793_s21  ;;  %p2807_p4 = scmp.ne.s32.totalorder (!%p2308_p8), %s2797_s9, 0 }
  0x74   : > { %2160 = dma.done.wait (%p2807_p4), %s333_s16, 4096  }
  0x75   : > { %2162 = vsyncadd (%p2807_p4), %s333_s16, 4294963200  ;;  %p2808_p9 = scmp.eq.s32.totalorder %s2287_s30, 0 }
  0x77   : > { %2164 = dma.done.wait (%p2808_p9), [#allocation7], 4096   ;;  %p2809_p8 = pmov %p2808_p9 }
  0x78   : > { %v1861_v0 = vld [vmem:[#allocation6 + $0x40] sm:$0xff]   ;;  %v1863_v2 = vld [vmem:[#allocation6 + $0x48] sm:$0xff]   ;;  %v1865_v4 = vld [vmem:[#allocation6 + $0x50] sm:$0xff]   ;;  %s2794_s8 = sshll.u32 %s2189_s27, 7  ;;  %s1625_s15 = sshll.u32 %s2442_s10, 7 }
  0x79   : > { %2166 = vsyncadd (%p2809_p8), [#allocation7], 4294963200  ;;  %v1862_v1 = vld [vmem:[#allocation6] sm:$0xff]   ;;  %1693 = vmatprep.subr.bf16.mxu0 %v1861_v0  ;;  %v1864_v3 = vld [vmem:[#allocation6 + $0x8] sm:$0xff]   ;;  %s2518_s17 = scalar_lea.vmem [#allocation10], %s1625_s15  ;;  %s1626_s19 = sshll.u32 %s2442_s10, 3 }
  0x7a   : > { %1694 = vmatpush3.bf16.msra.mxu0 %v1862_v1  ;;  %v1866_v5 = vld [vmem:[#allocation6 + $0x10] sm:$0xff]   ;;  %v1867_v6 = vld [vmem:[#allocation6 + $0x58] sm:$0xff]   ;;  %v1869_v8 = vld [vmem:[#allocation6 + $0x60] sm:$0xff]   ;;  %s2582_s13 = scalar_lea.vmem [#allocation12], %s1626_s19  ;;  %s1378_s14 = sand.u32 1, %s2287_s30  }
  0x7b   : > { %1695 = vmatprep.subr.bf16.mxu0 %v1863_v2  ;;  %v1868_v7 = vld [vmem:[#allocation6 + $0x18] sm:$0xff]   ;;  %v1870_v9 = vld [vmem:[#allocation6 + $0x20] sm:$0xff]   ;;  %v1871_v10 = vld [vmem:[#allocation6 + $0x68] sm:$0xff]   ;;  %s1692_s12 = sshll.u32 %s2189_s27, 11  ;;  %s1415_s11 = sshll.u32 %s2518_s17, 4  ;;  %s2593_s11 = int_to_ptr.vmem [resolvable:$true] %s1415_s11 }
  0x7c   : > { %v397_v11 = vld [vmem:[%s2448_s22 + $0x8] sm:$0xff]  ;;  %v399_v12 = vld [vmem:[%s2448_s22 + $0x18] sm:$0xff]  ;;  %v1873_v15 = vld [vmem:[#allocation6 + $0x70] sm:$0xff]   ;;  %s2590_s9 = scalar_lea.hbm %s2786_s6, %s1692_s12  ;;  %s2595_s15 = scalar_lea.sflag [#allocation11], %s1378_s14 }
  0x7d   : > { %v429_v13 = vpack.c.bf16 %v399_v12, %v397_v11  ;;  %v1872_v14 = vld [vmem:[#allocation6 + $0x28] sm:$0xff]   ;;  %v1874_v16 = vld [vmem:[#allocation6 + $0x30] sm:$0xff]   ;;  %v1875_v17 = vld [vmem:[#allocation6 + $0x78] sm:$0xff]   ;;  %s2051_s21 = scalar_lea.vmem %s2593_s11, 2048  ;;  %p2810_p2 = scmp.ne.s32.totalorder %s2804_s20, 0 }
  0x7e   : > { %1696 = vmatpush3.bf16.msra.mxu0 %v1864_v3  ;;  %v1876_v18 = vld [vmem:[#allocation6 + $0x38] sm:$0xff]   ;;  %v396_v19 = vld [vmem:[%s2448_s22] sm:$0xff]  ;;  %v398_v20 = vld [vmem:[%s2448_s22 + $0x10] sm:$0xff]  ;;  %p2052_p11 = scmp.ne.s32.totalorder %s2593_s11, %s2051_s21  ;;  %s2209_s30 = smov [#allocation10]  }
  0x7f   : > { %1697 = vmatprep.subr.bf16.mxu0 %v1865_v4  ;;  %611 = vmatprep.mubr.bf16.mxu0 %v429_v13  ;;  %v401_v21 = vld [vmem:[%s2448_s22 + $0x28] sm:$0xff]  ;;  %v403_v22 = vld [vmem:[%s2448_s22 + $0x38] sm:$0xff]  ;;  %v428_v23 = vpack.c.bf16 %v398_v20, %v396_v19  ;;  %v400_v25 = vld [vmem:[%s2448_s22 + $0x20] sm:$0xff]  ;;  %s2055_s19 = sshll.u32 %s2209_s30, 4  ;;  %s2056_s19 = int_to_ptr.vmem [resolvable:$false] %s2055_s19 }
  0x80   : > { %v431_v24 = vpack.c.bf16 %v403_v22, %v401_v21  ;;  %v402_v26 = vld [vmem:[%s2448_s22 + $0x30] sm:$0xff]  ;;  %v405_v27 = vld [vmem:[%s2448_s22 + $0x48] sm:$0xff]  ;;  %v407_v28 = vld [vmem:[%s2448_s22 + $0x58] sm:$0xff]  ;;  %p2053_p13 = pnand %p2052_p11, %p2810_p2  ;;  %p2058_p7 = scmp.lt.s32.totalorder %s2593_s11, %s2056_s19 }
  0x81   : > { %v430_v29 = vpack.c.bf16 %v402_v26, %v400_v25  ;;  %v433_v30 = vpack.c.bf16 %v407_v28, %v405_v27  ;;  %v404_v31 = vld [vmem:[%s2448_s22 + $0x40] sm:$0xff]  ;;  %v406_v32 = vld [vmem:[%s2448_s22 + $0x50] sm:$0xff]  ;;  %v409_v33 = vld [vmem:[%s2448_s22 + $0x68] sm:$0xff] }
  0x82   : > { %1698 = vmatpush3.bf16.msra.mxu0 %v1866_v5  ;;  %v411_v34 = vld [vmem:[%s2448_s22 + $0x78] sm:$0xff]  ;;  %v432_v35 = vpack.c.bf16 %v406_v32, %v404_v31  ;;  %v408_v37 = vld [vmem:[%s2448_s22 + $0x60] sm:$0xff]  ;;  %v410_v38 = vld [vmem:[%s2448_s22 + $0x70] sm:$0xff]  ;;  %p2054_p5 = pneg %p2053_p13 }
  0x83   : > { %1699 = vmatprep.subr.bf16.mxu0 %v1867_v6  ;;  %v435_v36 = vpack.c.bf16 %v411_v34, %v409_v33  ;;  %v413_v39 = vld [vmem:[%s2448_s22 + $0x88] sm:$0xff]  ;;  %v415_v40 = vld [vmem:[%s2448_s22 + $0x98] sm:$0xff]  ;;  %v434_v41 = vpack.c.bf16 %v410_v38, %v408_v37  ;;  %v412_v43 = vld [vmem:[%s2448_s22 + $0x80] sm:$0xff]  ;;  %v789_v37 = vlaneseq }
  0x84   : > { %v437_v42 = vpack.c.bf16 %v415_v40, %v413_v39  ;;  %v414_v44 = vld [vmem:[%s2448_s22 + $0x90] sm:$0xff]  ;;  %v417_v45 = vld [vmem:[%s2448_s22 + $0xa8] sm:$0xff]  ;;  %v419_v46 = vld [vmem:[%s2448_s22 + $0xb8] sm:$0xff] }
  0x85   : > { %v436_v47 = vpack.c.bf16 %v414_v44, %v412_v43  ;;  %v439_v48 = vpack.c.bf16 %v419_v46, %v417_v45  ;;  %v416_v49 = vld [vmem:[%s2448_s22 + $0xa0] sm:$0xff]  ;;  %v418_v50 = vld [vmem:[%s2448_s22 + $0xb0] sm:$0xff]  ;;  %v421_v51 = vld [vmem:[%s2448_s22 + $0xc8] sm:$0xff]  ;;  %v2500_v46 = vshrl.u32 %v789_v37, 7 }
  0x86   : > { %1700 = vmatpush3.bf16.msra.mxu0 %v1868_v7  ;;  %v423_v52 = vld [vmem:[%s2448_s22 + $0xd8] sm:$0xff]  ;;  %v438_v53 = vpack.c.bf16 %v418_v50, %v416_v49  ;;  %v420_v55 = vld [vmem:[%s2448_s22 + $0xc0] sm:$0xff]  ;;  %v422_v56 = vld [vmem:[%s2448_s22 + $0xd0] sm:$0xff] }
  0x87   : > { %1701 = vmatprep.subr.bf16.mxu0 %v1869_v8  ;;  %v441_v54 = vpack.c.bf16 %v423_v52, %v421_v51  ;;  %v425_v57 = vld [vmem:[%s2448_s22 + $0xe8] sm:$0xff]  ;;  %v427_v58 = vld [vmem:[%s2448_s22 + $0xf8] sm:$0xff]  ;;  %v440_v59 = vpack.c.bf16 %v422_v56, %v420_v55  ;;  %v424_v61 = vld [vmem:[%s2448_s22 + $0xe0] sm:$0xff] }
  0x88   : > { %v443_v60 = vpack.c.bf16 %v427_v58, %v425_v57  ;;  %v426_v62 = vld [vmem:[%s2448_s22 + $0xf0] sm:$0xff]  ;;  %v1877_v0 = vld [vmem:[#allocation8 + $0x4] ss:$8 sps:$4 sm:$0xff]   ;;  %v1879_v1 = vld [vmem:[#allocation8] ss:$8 sps:$4 sm:$0xff]  }
  0x89   : > { %v442_v63 = vpack.c.bf16 %v426_v62, %v424_v61  ;;  %1013 = vmatprep.subr.bf16.mxu1 %v1877_v0  ;;  %v1880_v2 = vld [vmem:[#allocation8 + $0x14] ss:$8 sps:$4 sm:$0xff]   ;;  %v1882_v3 = vld [vmem:[#allocation8 + $0x10] ss:$8 sps:$4 sm:$0xff]   ;;  %v1883_v4 = vld [vmem:[#allocation8 + $0x24] ss:$8 sps:$4 sm:$0xff]  }
  0x8a   : > { %1702 = vmatpush3.bf16.msra.mxu0 %v1870_v9  ;;  %1014 = vmatpush1.bf16.msra.mxu1 %v1879_v1  ;;  %v1885_v5 = vld [vmem:[#allocation8 + $0x20] ss:$8 sps:$4 sm:$0xff]   ;;  %v1886_v6 = vld [vmem:[#allocation8 + $0x34] ss:$8 sps:$4 sm:$0xff]   ;;  %v1888_v7 = vld [vmem:[#allocation8 + $0x30] ss:$8 sps:$4 sm:$0xff]  }
  0x8b   : > { %1703 = vmatprep.subr.bf16.mxu0 %v1871_v10  ;;  %1015 = vmatprep.subr.bf16.mxu1 %v1880_v2  ;;  %v1889_v8 = vld [vmem:[#allocation8 + $0x44] ss:$8 sps:$4 sm:$0xff]   ;;  %v1891_v9 = vld [vmem:[#allocation8 + $0x40] ss:$8 sps:$4 sm:$0xff]   ;;  %v1892_v10 = vld [vmem:[#allocation8 + $0x54] ss:$8 sps:$4 sm:$0xff]  }
  0x8c   : > { %v1894_v11 = vld [vmem:[#allocation8 + $0x50] ss:$8 sps:$4 sm:$0xff]   ;;  %v1895_v12 = vld [vmem:[#allocation8 + $0x64] ss:$8 sps:$4 sm:$0xff]   ;;  %v1897_v13 = vld [vmem:[#allocation8 + $0x60] ss:$8 sps:$4 sm:$0xff]  }
  0x8e   : > { %1704 = vmatpush3.bf16.msra.mxu0 %v1872_v14  ;;  %1016 = vmatpush1.bf16.msra.mxu1 %v1882_v3  ;;  %v1898_v14 = vld [vmem:[#allocation8 + $0x74] ss:$8 sps:$4 sm:$0xff]  }
  0x8f   : > { %1705 = vmatprep.subr.bf16.mxu0 %v1873_v15  ;;  %1017 = vmatprep.subr.bf16.mxu1 %v1883_v4  ;;  %v1900_v15 = vld [vmem:[#allocation8 + $0x70] ss:$8 sps:$4 sm:$0xff]  }
  0x92   : > { %1706 = vmatpush3.bf16.msra.mxu0 %v1874_v16  ;;  %1018 = vmatpush1.bf16.msra.mxu1 %v1885_v5  ;;  %v2208_v16 = vmov 0   ;;  %v792_v5 = vadd.s32 16, %v2500_v46 }
  0x93   : > { %1707 = vmatprep.subr.bf16.mxu0 %v1875_v17  ;;  %1019 = vmatprep.subr.bf16.mxu1 %v1886_v6 }
  0x94   : > { %1045 = vmatprep.mubr.bf16.mxu1 %v2208_v16 }
  0x96   : > { %1708 = vmatpush3.bf16.msra.mxu0 %v1876_v18  ;;  %1020 = vmatpush1.bf16.msra.mxu1 %v1888_v7  ;;  %v2494_v18 = vld [vmem:[%s2782_s2] ss:$0 sm:$0xff] }
  0x97   : > { %1021 = vmatprep.subr.bf16.mxu1 %v1889_v8 }
  0x99   : > { %612 = vmatmul.mubr.bf16.vlgmr.msra.gmra.mrb[0].mxu0 %v428_v23 }
  0x9a   : > { %619 = vmatprep.mubr.bf16.mxu0 %v431_v24  ;;  %1022 = vmatpush1.bf16.msra.mxu1 %v1891_v9  ;;  %v793_v9 = vadd.s32 24, %v2500_v46 }
  0x9b   : > { %1023 = vmatprep.subr.bf16.mxu1 %v1892_v10 }
  0x9e   : > { %1024 = vmatpush1.bf16.msra.mxu1 %v1894_v11 }
  0x9f   : > { %1025 = vmatprep.subr.bf16.mxu1 %v1895_v12 }
  0xa1   : > { %620 = vmatmul.mubr.bf16.gmra.mrb[4].mxu0 %v430_v29 }
  0xa2   : > { %627 = vmatprep.mubr.bf16.mxu0 %v433_v30  ;;  %1026 = vmatpush1.bf16.msra.mxu1 %v1897_v13 }
  0xa3   : > { %1027 = vmatprep.subr.bf16.mxu1 %v1898_v14 }
  0xa6   : > { %1028 = vmatpush1.bf16.msra.mxu1 %v1900_v15 }
  0xa9   : > { %628 = vmatmul.mubr.bf16.gmra.mrb[8].mxu0 %v432_v35 }
  0xaa   : > { %635 = vmatprep.mubr.bf16.mxu0 %v435_v36 }
  0xb1   : > { %636 = vmatmul.mubr.bf16.gmra.mrb[12].mxu0 %v434_v41 }
  0xb2   : > { %643 = vmatprep.mubr.bf16.mxu0 %v437_v42 }
  0xb9   : > { %644 = vmatmul.mubr.bf16.gmra.mrb[16].mxu0 %v436_v47 }
  0xba   : > { %651 = vmatprep.mubr.bf16.mxu0 %v439_v48 }
  0xc1   : > { %652 = vmatmul.mubr.bf16.gmra.mrb[20].mxu0 %v438_v53  ;;  %v791_v53 = vadd.s32 8, %v2500_v46 }
  0xc2   : > { %659 = vmatprep.mubr.bf16.mxu0 %v441_v54  ;;  %v2508_v54 = vstv %s2794_s8  ;;  %s2057_s8 = scalar_lea.vmem %s2056_s19, 4096 }
  0xc3   : > { %v807_v61 = vadd.s32 %v2508_v54, %v2500_v46  ;;  %v808_v0 = vadd.s32 %v2508_v54, %v791_v53  ;;  %v809_v14 = vadd.s32 %v2508_v54, %v792_v5  ;;  %p2059_p12 = scmp.lt.s32.totalorder %s2057_s8, %s2051_s21 }
  0xc5   : > { %vm823_vm0 = vcmp.lt.s32.totalorder %v807_v61, 256  ;;  %vm824_vm1 = vcmp.lt.s32.totalorder %v808_v0, 256  ;;  %vm825_vm2 = vcmp.lt.s32.totalorder %v809_v14, 256  ;;  %p2060_p0 = por %p2059_p12, %p2058_p7 }
  0xc7   : > { %p2061_p1 = pnand %p2060_p0, %p2054_p5 }
  0xc9   : > { %660 = vmatmul.mubr.bf16.gmra.mrb[24].mxu0 %v440_v59 }
  0xca   : > { %667 = vmatprep.mubr.bf16.mxu0 %v443_v60 }
  0xd1   : > { %668 = vmatmul.mubr.bf16.gmra.mrb[28].mxu0 %v442_v63 }
 0x16c   : > { %v1709_v17 = vpop.f32.mrb[0].mxu0 }
 0x16d   : > { %v1710_v19 = vpop.f32.mrb[1].mxu0 }
 0x16e   : > { %v1711_v20 = vadd.f32 %v1710_v19, %v1709_v17  ;;  %v1712_v21 = vpop.f32.mrb[2].mxu0 }
 0x16f   : > { %v1713_v22 = vpop.f32.mrb[3].mxu0 }
 0x170   : > { %v614_v23 = vadd.f32 %v1711_v20, %v2494_v18  ;;  %v1714_v24 = vadd.f32 %v1713_v22, %v1712_v21 }
 0x172   : > { %v1644_v25 = vmul.f32 -1.442695, %v614_v23  ;;  %v617_v26 = vadd.f32 %v1714_v24, %v2494_v18 }
 0x174   : > { %1901 = vpow2.f32 %v1644_v25  ;;  %v1645_v27 = vmul.f32 -1.442695, %v617_v26  ;;  %v1715_v28 = vpop.f32.mrb[4].mxu0  ;;  %v810_v25 = vadd.s32 %v2508_v54, %v793_v9 }
 0x175   : > { %v1716_v29 = vpop.f32.mrb[5].mxu0 }
 0x176   : > { %1903 = vpow2.f32 %v1645_v27  ;;  %v1717_v30 = vadd.f32 %v1716_v29, %v1715_v28  ;;  %v1718_v31 = vpop.f32.mrb[6].mxu0  ;;  %vm826_vm3 = vcmp.lt.s32.totalorder %v810_v25, 256  ;;  %v799_v25 = vadd.s32 72, %v2500_v46 }
 0x177   : > { %v1719_v32 = vpop.f32.mrb[7].mxu0 }
 0x178   : > { %v622_v33 = vadd.f32 %v1717_v30, %v2494_v18  ;;  %v1720_v34 = vadd.f32 %v1719_v32, %v1718_v31  ;;  %v794_v31 = vadd.s32 32, %v2500_v46 }
 0x17a   : > { %v1646_v35 = vmul.f32 -1.442695, %v622_v33  ;;  %v625_v36 = vadd.f32 %v1720_v34, %v2494_v18 }
 0x17c   : > { %1905 = vpow2.f32 %v1646_v35  ;;  %v1647_v38 = vmul.f32 -1.442695, %v625_v36  ;;  %v1721_v39 = vpop.f32.mrb[8].mxu0  ;;  %v795_v35 = vadd.s32 40, %v2500_v46 }
 0x17d   : > { %v1722_v40 = vpop.f32.mrb[9].mxu0 }
 0x17e   : > { %v1902_v41 = vpop.eup %1901  ;;  %1907 = vpow2.f32 %v1647_v38  ;;  %v1723_v42 = vadd.f32 %v1722_v40, %v1721_v39  ;;  %v1724_v43 = vpop.f32.mrb[10].mxu0 }
 0x17f   : > { %v724_v44 = vadd.f32 1.0, %v1902_v41  ;;  %v1725_v45 = vpop.f32.mrb[11].mxu0  ;;  %v811_v41 = vadd.s32 %v2508_v54, %v794_v31 }
 0x180   : > { %v1904_v47 = vpop.eup %1903  ;;  %v630_v48 = vadd.f32 %v1723_v42, %v2494_v18  ;;  %v1726_v49 = vadd.f32 %v1725_v45, %v1724_v43 }
 0x181   : > { %1909 = vrcp.f32 %v724_v44  ;;  %v725_v50 = vadd.f32 1.0, %v1904_v47  ;;  %vm827_vm4 = vcmp.lt.s32.totalorder %v811_v41, 256 }
 0x182   : > { %v1648_v51 = vmul.f32 -1.442695, %v630_v48  ;;  %v633_v52 = vadd.f32 %v1726_v49, %v2494_v18 }
 0x183   : > { %1911 = vrcp.f32 %v725_v50 }
 0x184   : > { %1913 = vpow2.f32 %v1648_v51  ;;  %v1649_v55 = vmul.f32 -1.442695, %v633_v52  ;;  %v1727_v56 = vpop.f32.mrb[12].mxu0  ;;  %v812_v51 = vadd.s32 %v2508_v54, %v795_v35 }
 0x185   : > { %v1728_v57 = vpop.f32.mrb[13].mxu0 }
 0x186   : > { %v1906_v58 = vpop.eup %1905  ;;  %1915 = vpow2.f32 %v1649_v55  ;;  %v1729_v59 = vadd.f32 %v1728_v57, %v1727_v56  ;;  %v1730_v60 = vpop.f32.mrb[14].mxu0  ;;  %vm828_vm5 = vcmp.lt.s32.totalorder %v812_v51, 256  ;;  %v801_v51 = vadd.s32 88, %v2500_v46 }
 0x187   : > { %v726_v62 = vadd.f32 1.0, %v1906_v58  ;;  %v1731_v63 = vpop.f32.mrb[15].mxu0  ;;  %v796_v58 = vadd.s32 48, %v2500_v46 }
 0x188   : > { %v1908_v1 = vpop.eup %1907  ;;  %v638_v2 = vadd.f32 %v1729_v59, %v2494_v18  ;;  %v1732_v3 = vadd.f32 %v1731_v63, %v1730_v60 }
 0x189   : > { %1917 = vrcp.f32 %v726_v62  ;;  %v727_v4 = vadd.f32 1.0, %v1908_v1  ;;  %v797_v62 = vadd.s32 56, %v2500_v46 }
 0x18a   : > { %v1650_v6 = vmul.f32 -1.442695, %v638_v2  ;;  %v641_v7 = vadd.f32 %v1732_v3, %v2494_v18 }
 0x18b   : > { %v1910_v8 = vpop.eup %1909  ;;  %1919 = vrcp.f32 %v727_v4  ;;  %v813_v4 = vadd.s32 %v2508_v54, %v796_v58 }
 0x18c   : > { %772 = vst [vmem:[%s2518_s17] sm:$0xff] %v1910_v8  ;;  %1921 = vpow2.f32 %v1650_v6  ;;  %v1651_v10 = vmul.f32 -1.442695, %v641_v7  ;;  %v1733_v11 = vpop.f32.mrb[16].mxu0  ;;  %v871_v15 = vsel %vm823_vm0, %v1910_v8, 0.0 }
 0x18d   : > { %v1912_v12 = vpop.eup %1911  ;;  %v1734_v13 = vpop.f32.mrb[17].mxu0  ;;  %vm829_vm6 = vcmp.lt.s32.totalorder %v813_v4, 256 }
 0x18e   : > { %v1914_v17 = vpop.eup %1913  ;;  %773 = vst [vmem:[%s2518_s17 + $0x8] sm:$0xff] %v1912_v12  ;;  %1923 = vpow2.f32 %v1651_v10  ;;  %v1735_v19 = vadd.f32 %v1734_v13, %v1733_v11  ;;  %v1736_v20 = vpop.f32.mrb[18].mxu0  ;;  %v909_v21 = vpack.c.bf16 %v1912_v12, %v1910_v8  ;;  %v872_v22 = vsel %vm824_vm1, %v1912_v12, 0.0 }
 0x18f   : > { %v728_v23 = vadd.f32 1.0, %v1914_v17  ;;  %v1737_v24 = vpop.f32.mrb[19].mxu0  ;;  %v887_v26 = vadd.f32 %v872_v22, %v871_v15  ;;  %v814_v13 = vadd.s32 %v2508_v54, %v797_v62 }
 0x190   : > { %v1916_v27 = vpop.eup %1915  ;;  %v646_v28 = vadd.f32 %v1735_v19, %v2494_v18  ;;  %v1738_v29 = vadd.f32 %v1737_v24, %v1736_v20  ;;  %1046 = vmatmul.mubr.bf16.vlgmr.msra.gmra.mrb[0].mxu1 %v909_v21  ;;  %v798_v21 = vadd.s32 64, %v2500_v46 }
 0x191   : > { %1925 = vrcp.f32 %v728_v23  ;;  %v729_v30 = vadd.f32 1.0, %v1916_v27  ;;  %1055 = vmatprep.mubr.bf16.mxu1 %v2208_v16  ;;  %vm830_vm7 = vcmp.lt.s32.totalorder %v814_v13, 256 }
 0x192   : > { %v1652_v32 = vmul.f32 -1.442695, %v646_v28  ;;  %v649_v33 = vadd.f32 %v1738_v29, %v2494_v18  ;;  %v815_v31 = vadd.s32 %v2508_v54, %v798_v21 }
 0x193   : > { %v1918_v34 = vpop.eup %1917  ;;  %1927 = vrcp.f32 %v729_v30 }
 0x194   : > { %774 = vst [vmem:[%s2518_s17 + $0x10] sm:$0xff] %v1918_v34  ;;  %1929 = vpow2.f32 %v1652_v32  ;;  %v1653_v36 = vmul.f32 -1.442695, %v649_v33  ;;  %v1739_v37 = vpop.f32.mrb[20].mxu0  ;;  %v873_v38 = vsel %vm825_vm2, %v1918_v34, 0.0  ;;  %vm831_vm8 = vcmp.lt.s32.totalorder %v815_v31, 256 }
 0x195   : > { %v1920_v39 = vpop.eup %1919  ;;  %v1740_v40 = vpop.f32.mrb[21].mxu0  ;;  %v888_v42 = vadd.f32 %v887_v26, %v873_v38 }
 0x196   : > { %v1922_v43 = vpop.eup %1921  ;;  %775 = vst [vmem:[%s2518_s17 + $0x18] sm:$0xff] %v1920_v39  ;;  %1931 = vpow2.f32 %v1653_v36  ;;  %v1741_v44 = vadd.f32 %v1740_v40, %v1739_v37  ;;  %v1742_v45 = vpop.f32.mrb[22].mxu0  ;;  %v910_v47 = vpack.c.bf16 %v1920_v39, %v1918_v34  ;;  %v874_v48 = vsel %vm826_vm3, %v1920_v39, 0.0 }
 0x197   : > { %v730_v49 = vadd.f32 1.0, %v1922_v43  ;;  %v1743_v50 = vpop.f32.mrb[23].mxu0  ;;  %v889_v52 = vadd.f32 %v888_v42, %v874_v48  ;;  %v816_v40 = vadd.s32 %v2508_v54, %v799_v25 }
 0x198   : > { %v1924_v53 = vpop.eup %1923  ;;  %v654_v55 = vadd.f32 %v1741_v44, %v2494_v18  ;;  %v1744_v56 = vadd.f32 %v1743_v50, %v1742_v45  ;;  %1056 = vmatmul.mubr.bf16.gmra.mrb[4].mxu1 %v910_v47  ;;  %v800_v47 = vadd.s32 80, %v2500_v46 }
 0x199   : > { %1933 = vrcp.f32 %v730_v49  ;;  %v731_v57 = vadd.f32 1.0, %v1924_v53  ;;  %1065 = vmatprep.mubr.bf16.mxu1 %v2208_v16  ;;  %vm832_vm9 = vcmp.lt.s32.totalorder %v816_v40, 256 }
 0x19a   : > { %v1654_v59 = vmul.f32 -1.442695, %v654_v55  ;;  %v657_v60 = vadd.f32 %v1744_v56, %v2494_v18  ;;  %v817_v56 = vadd.s32 %v2508_v54, %v800_v47 }
 0x19b   : > { %v1926_v61 = vpop.eup %1925  ;;  %1935 = vrcp.f32 %v731_v57 }
 0x19c   : > { %776 = vst [vmem:[%s2518_s17 + $0x20] sm:$0xff] %v1926_v61  ;;  %1937 = vpow2.f32 %v1654_v59  ;;  %v1655_v63 = vmul.f32 -1.442695, %v657_v60  ;;  %v1745_v0 = vpop.f32.mrb[24].mxu0  ;;  %v875_v1 = vsel %vm827_vm4, %v1926_v61, 0.0  ;;  %vm833_vm10 = vcmp.lt.s32.totalorder %v817_v56, 256 }
 0x19d   : > { %v1928_v2 = vpop.eup %1927  ;;  %v1746_v3 = vpop.f32.mrb[25].mxu0  ;;  %v890_v5 = vadd.f32 %v889_v52, %v875_v1  ;;  %v802_v1 = vadd.s32 96, %v2500_v46 }
 0x19e   : > { %v1930_v6 = vpop.eup %1929  ;;  %777 = vst [vmem:[%s2518_s17 + $0x28] sm:$0xff] %v1928_v2  ;;  %1939 = vpow2.f32 %v1655_v63  ;;  %v1747_v7 = vadd.f32 %v1746_v3, %v1745_v0  ;;  %v1748_v8 = vpop.f32.mrb[26].mxu0  ;;  %v911_v9 = vpack.c.bf16 %v1928_v2, %v1926_v61  ;;  %v876_v10 = vsel %vm828_vm5, %v1928_v2, 0.0 }
 0x19f   : > { %v732_v11 = vadd.f32 1.0, %v1930_v6  ;;  %v1749_v12 = vpop.f32.mrb[27].mxu0  ;;  %v891_v14 = vadd.f32 %v890_v5, %v876_v10  ;;  %v818_v61 = vadd.s32 %v2508_v54, %v801_v51  ;;  %v803_v3 = vadd.s32 104, %v2500_v46 }
 0x1a0   : > { %v1932_v15 = vpop.eup %1931  ;;  %v662_v17 = vadd.f32 %v1747_v7, %v2494_v18  ;;  %v1750_v19 = vadd.f32 %v1749_v12, %v1748_v8  ;;  %1066 = vmatmul.mubr.bf16.gmra.mrb[8].mxu1 %v911_v9  ;;  %v819_v6 = vadd.s32 %v2508_v54, %v802_v1 }
 0x1a1   : > { %1941 = vrcp.f32 %v732_v11  ;;  %v733_v20 = vadd.f32 1.0, %v1932_v15  ;;  %1075 = vmatprep.mubr.bf16.mxu1 %v2208_v16  ;;  %vm834_vm11 = vcmp.lt.s32.totalorder %v818_v61, 256  ;;  %v820_v12 = vadd.s32 %v2508_v54, %v803_v3 }
 0x1a2   : > { %v1656_v22 = vmul.f32 -1.442695, %v662_v17  ;;  %v665_v23 = vadd.f32 %v1750_v19, %v2494_v18  ;;  %v804_v17 = vadd.s32 112, %v2500_v46  ;;  %vm835_vm12 = vcmp.lt.s32.totalorder %v819_v6, 256 }
 0x1a3   : > { %v1934_v24 = vpop.eup %1933  ;;  %1943 = vrcp.f32 %v733_v20  ;;  %v805_v20 = vadd.s32 120, %v2500_v46  ;;  %vm836_vm13 = vcmp.lt.s32.totalorder %v820_v12, 256 }
 0x1a4   : > { %778 = vst [vmem:[%s2518_s17 + $0x30] sm:$0xff] %v1934_v24  ;;  %1945 = vpow2.f32 %v1656_v22  ;;  %v1657_v26 = vmul.f32 -1.442695, %v665_v23  ;;  %v1751_v27 = vpop.f32.mrb[28].mxu0  ;;  %v877_v28 = vsel %vm829_vm6, %v1934_v24, 0.0  ;;  %v821_v23 = vadd.s32 %v2508_v54, %v804_v17 }
 0x1a5   : > { %v1936_v29 = vpop.eup %1935  ;;  %v1752_v30 = vpop.f32.mrb[29].mxu0  ;;  %v892_v32 = vadd.f32 %v891_v14, %v877_v28 }
 0x1a6   : > { %v1938_v33 = vpop.eup %1937  ;;  %779 = vst [vmem:[%s2518_s17 + $0x38] sm:$0xff] %v1936_v29  ;;  %1947 = vpow2.f32 %v1657_v26  ;;  %v1753_v34 = vadd.f32 %v1752_v30, %v1751_v27  ;;  %v1754_v35 = vpop.f32.mrb[30].mxu0  ;;  %v912_v36 = vpack.c.bf16 %v1936_v29, %v1934_v24  ;;  %v878_v37 = vsel %vm830_vm7, %v1936_v29, 0.0 }
 0x1a7   : > { %v734_v38 = vadd.f32 1.0, %v1938_v33  ;;  %v1755_v39 = vpop.f32.mrb[31].mxu0  ;;  %v893_v41 = vadd.f32 %v892_v32, %v878_v37  ;;  %v822_v27 = vadd.s32 %v2508_v54, %v805_v20  ;;  %vm837_vm14 = vcmp.lt.s32.totalorder %v821_v23, 256 }
 0x1a8   : > { %v1940_v42 = vpop.eup %1939  ;;  %v670_v43 = vadd.f32 %v1753_v34, %v2494_v18  ;;  %v1756_v44 = vadd.f32 %v1755_v39, %v1754_v35  ;;  %1076 = vmatmul.mubr.bf16.gmra.mrb[12].mxu1 %v912_v36 }
 0x1a9   : > { %1949 = vrcp.f32 %v734_v38  ;;  %v735_v45 = vadd.f32 1.0, %v1940_v42  ;;  %1085 = vmatprep.mubr.bf16.mxu1 %v2208_v16  ;;  %vm838_vm15 = vcmp.lt.s32.totalorder %v822_v27, 256 }
 0x1aa   : > { %v1658_v48 = vmul.f32 -1.442695, %v670_v43  ;;  %v673_v49 = vadd.f32 %v1756_v44, %v2494_v18 }
 0x1ab   : > { %v1942_v50 = vpop.eup %1941  ;;  %1951 = vrcp.f32 %v735_v45 }
 0x1ac   : > { %780 = vst [vmem:[%s2518_s17 + $0x40] sm:$0xff] %v1942_v50  ;;  %1953 = vpow2.f32 %v1658_v48  ;;  %v1659_v52 = vmul.f32 -1.442695, %v673_v49  ;;  %v879_v53 = vsel %vm831_vm8, %v1942_v50, 0.0 }
 0x1ad   : > { %v1944_v55 = vpop.eup %1943  ;;  %v894_v57 = vadd.f32 %v893_v41, %v879_v53 }
 0x1ae   : > { %v1946_v58 = vpop.eup %1945  ;;  %781 = vst [vmem:[%s2518_s17 + $0x48] sm:$0xff] %v1944_v55  ;;  %1955 = vpow2.f32 %v1659_v52  ;;  %v913_v59 = vpack.c.bf16 %v1944_v55, %v1942_v50  ;;  %v880_v60 = vsel %vm832_vm9, %v1944_v55, 0.0 }
 0x1af   : > { %v736_v18 = vadd.f32 1.0, %v1946_v58  ;;  %v895_v62 = vadd.f32 %v894_v57, %v880_v60 }
 0x1b0   : > { %v1948_v63 = vpop.eup %1947  ;;  %1086 = vmatmul.mubr.bf16.gmra.mrb[16].mxu1 %v913_v59 }
 0x1b1   : > { %1957 = vrcp.f32 %v736_v18  ;;  %v737_v0 = vadd.f32 1.0, %v1948_v63  ;;  %1095 = vmatprep.mubr.bf16.mxu1 %v2208_v16 }
 0x1b3   : > { %v1950_v2 = vpop.eup %1949  ;;  %1959 = vrcp.f32 %v737_v0 }
 0x1b4   : > { %782 = vst [vmem:[%s2518_s17 + $0x50] sm:$0xff] %v1950_v2  ;;  %v881_v4 = vsel %vm833_vm10, %v1950_v2, 0.0 }
 0x1b5   : > { %v1952_v5 = vpop.eup %1951  ;;  %v896_v7 = vadd.f32 %v895_v62, %v881_v4 }
 0x1b6   : > { %v1954_v8 = vpop.eup %1953  ;;  %783 = vst [vmem:[%s2518_s17 + $0x58] sm:$0xff] %v1952_v5  ;;  %v914_v9 = vpack.c.bf16 %v1952_v5, %v1950_v2  ;;  %v882_v10 = vsel %vm834_vm11, %v1952_v5, 0.0 }
 0x1b7   : > { %v738_v11 = vadd.f32 1.0, %v1954_v8  ;;  %v897_v13 = vadd.f32 %v896_v7, %v882_v10 }
 0x1b8   : > { %v1956_v14 = vpop.eup %1955  ;;  %1096 = vmatmul.mubr.bf16.gmra.mrb[20].mxu1 %v914_v9 }
 0x1b9   : > { %1961 = vrcp.f32 %v738_v11  ;;  %v739_v15 = vadd.f32 1.0, %v1956_v14  ;;  %1105 = vmatprep.mubr.bf16.mxu1 %v2208_v16 }
 0x1bb   : > { %v1958_v19 = vpop.eup %1957  ;;  %1963 = vrcp.f32 %v739_v15 }
 0x1bc   : > { %784 = vst [vmem:[%s2518_s17 + $0x60] sm:$0xff] %v1958_v19  ;;  %v883_v21 = vsel %vm835_vm12, %v1958_v19, 0.0 }
 0x1bd   : > { %v1960_v22 = vpop.eup %1959  ;;  %v898_v24 = vadd.f32 %v897_v13, %v883_v21 }
 0x1be   : > { %785 = vst [vmem:[%s2518_s17 + $0x68] sm:$0xff] %v1960_v22  ;;  %v915_v25 = vpack.c.bf16 %v1960_v22, %v1958_v19  ;;  %v884_v26 = vsel %vm836_vm13, %v1960_v22, 0.0 }
 0x1bf   : > { %v899_v28 = vadd.f32 %v898_v24, %v884_v26 }
 0x1c0   : > { %1106 = vmatmul.mubr.bf16.gmra.mrb[24].mxu1 %v915_v25 }
 0x1c1   : > { %1115 = vmatprep.mubr.bf16.mxu1 %v2208_v16 }
 0x1c3   : > { %v1962_v29 = vpop.eup %1961 }
 0x1c4   : > { %786 = vst [vmem:[%s2518_s17 + $0x70] sm:$0xff] %v1962_v29  ;;  %v885_v30 = vsel %vm837_vm14, %v1962_v29, 0.0 }
 0x1c5   : > { %v1964_v31 = vpop.eup %1963  ;;  %v900_v32 = vadd.f32 %v899_v28, %v885_v30 }
 0x1c6   : > { %787 = vst [vmem:[%s2518_s17 + $0x78] sm:$0xff] %v1964_v31  ;;  %v916_v33 = vpack.c.bf16 %v1964_v31, %v1962_v29  ;;  %v886_v34 = vsel %vm838_vm15, %v1964_v31, 0.0 }
 0x1c7   : > { %v901_v35 = vadd.f32 %v900_v32, %v886_v34 }
 0x1c8   : > { %1116 = vmatmul.mubr.bf16.gmra.mrb[28].mxu1 %v916_v33 }
 0x1c9   : > { %v902_v54 = vrot.slane %v901_v35, 4 }
 0x1cb   : > { %v903_v36 = vadd.f32 %v902_v54, %v901_v35 }
 0x1cd   : > { %v904_v16 = vrot.slane %v903_v36, 2 }
 0x1cf   : > { %v905_v37 = vadd.f32 %v904_v16, %v903_v36 }
 0x1d1   : > { %v906_v38 = vrot.slane %v905_v37, 1 }
 0x1d3   : > { %v907_v39 = vadd.f32 %v906_v38, %v905_v37 }
 0x1d5   : > { %908 = vst [vmem:[%s2582_s13] sm:$0xff] %v907_v39 }
 0x1d6   : > { %2064 = shalt.err (!%p2061_p1)
}
 0x1d7   : > { %s2065_s17 = scalar_lea.hbm %s2590_s9, 2048  ;;  %s2069_s16 = scalar_lea.hbm %s2786_s6, 4096 }
 0x1d8   : > { %p2066_p6 = scmp.ne.s32.totalorder %s2590_s9, %s2065_s17  ;;  %p2070_p4 = scmp.lt.u32.totalorder %s2590_s9, %s2786_s6 }
 0x1d9   : > { %p2071_p9 = scmp.lt.u32.totalorder %s2069_s16, %s2065_s17  ;;  %p2073_p11 = scmp.lt.u32.totalorder %s2065_s17, %s2590_s9 }
 0x1da   : > { %p2067_p10 = pnand %p2066_p6, %p2810_p2 }
 0x1db   : > { %p2072_p8 = por %p2071_p9, %p2070_p4 }
 0x1dc   : > { %p2068_p3 = pneg %p2067_p10 }
 0x1dd   : > { %p2074_p13 = por %p2073_p11, %p2072_p8 }
 0x1df   : > { %p2075_p5 = pnand %p2074_p13, %p2068_p3 }
 0x1e1   : > { %2078 = shalt.err (!%p2075_p5)
}
 0x1e2   : > { %s2210_s21 = smov 128   ;;  %s2211_s8 = smov 8  }
 0x1e3   : > { %1768 = dma.vmem_to_hbm [thread:$0]  (%p2810_p2), %s2593_s11, 2048, %s2590_s9, %s2595_s15, %s2210_s21, %s2210_s21, %s2211_s8  }
 0x1e4   : > { %s2811_s19 = sshll.u32 %s2189_s27, 7  ;;  %s1432_s17 = sshll.u32 %s2582_s13, 4  ;;  %s1433_s17 = int_to_ptr.vmem [resolvable:$true] %s1432_s17 }
 0x1e5   : > { %s2624_s16 = scalar_lea.hbm %s2787_s7, %s2811_s19  ;;  %s2079_s22 = scalar_lea.vmem %s1433_s17, 128 }
 0x1e6   : > { %p2080_p7 = scmp.ne.s32.totalorder %s1433_s17, %s2079_s22  ;;  %s2212_s30 = smov [#allocation12]  }
 0x1e7   : > { %s2083_s0 = sshll.u32 %s2212_s30, 4  ;;  %s2084_s0 = int_to_ptr.vmem [resolvable:$false] %s2083_s0 }
 0x1e8   : > { %p2081_p12 = pnand %p2080_p7, %p2810_p2  ;;  %s2085_s1 = scalar_lea.vmem %s2084_s0, 256 }
 0x1e9   : > { %p2086_p1 = scmp.lt.s32.totalorder %s1433_s17, %s2084_s0  ;;  %p2087_p6 = scmp.lt.s32.totalorder %s2085_s1, %s2079_s22 }
 0x1ea   : > { %p2082_p0 = pneg %p2081_p12 }
 0x1eb   : > { %p2088_p10 = por %p2087_p6, %p2086_p1 }
 0x1ed   : > { %p2089_p3 = pnand %p2088_p10, %p2082_p0 }
 0x1ef   : > { %2092 = shalt.err (!%p2089_p3)
}
 0x1f0   : > { %s2093_s13 = scalar_lea.hbm %s2624_s16, 128  ;;  %s2097_s21 = scalar_lea.hbm %s2787_s7, 256 }
 0x1f1   : > { %p2094_p4 = scmp.ne.s32.totalorder %s2624_s16, %s2093_s13  ;;  %p2098_p11 = scmp.lt.u32.totalorder %s2624_s16, %s2787_s7 }
 0x1f2   : > { %p2099_p13 = scmp.lt.u32.totalorder %s2097_s21, %s2093_s13  ;;  %p2101_p7 = scmp.lt.u32.totalorder %s2093_s13, %s2624_s16 }
 0x1f3   : > { %p2095_p9 = pnand %p2094_p4, %p2810_p2 }
 0x1f4   : > { %p2100_p5 = por %p2099_p13, %p2098_p11 }
 0x1f5   : > { %p2096_p8 = pneg %p2095_p9 }
 0x1f6   : > { %p2102_p12 = por %p2101_p7, %p2100_p5 }
 0x1f8   : > { %p2103_p0 = pnand %p2102_p12, %p2096_p8 }
 0x1fa   : > { %2106 = shalt.err (!%p2103_p0)
}
 0x1fb   : > { %1769 = dma.vmem_to_hbm [thread:$0]  (%p2810_p2), %s1433_s17, 128, %s2624_s16, %s2595_s15   ;;  %v1134_v40 = vsub.s32 0, %v2500_v46  ;;  %v1130_v41 = vld [vmem:[%s2784_s4] sm:$0x3]  ;;  %v1138_v42 = vsub.s32 1, %v2500_v46 }
 0x1fc   : > { %s2812_s15 = sshll.u32 %s2442_s10, 8  ;;  %s1691_s12 = sshll.u32 %s2189_s27, 12 }
 0x1fd   : > { %v2650_v43 = vrot.slane %v1130_v41, %v1134_v40  ;;  %v2652_v44 = vrot.slane %v1130_v41, %v1138_v42  ;;  %s2658_s14 = scalar_lea.vmem [#allocation9], %s2812_s15  ;;  %s2723_s30 = scalar_lea.hbm %s2785_s5, %s1691_s12 }
 0x1fe   : > { %s1398_s16 = sshll.u32 %s2658_s14, 4  ;;  %s1374_s27 = scalar_lea.sflag [#allocation5], %s2442_s10  ;;  %s2725_s16 = int_to_ptr.vmem [resolvable:$true] %s1398_s16 }
 0x1ff   : > { %s2107_s13 = scalar_lea.vmem %s2725_s16, 4096  ;;  %s2213_s9 = smov [#allocation9]  }
 0x200   : > { %p2108_p1 = scmp.ne.s32.totalorder %s2725_s16, %s2107_s13  ;;  %s2111_s11 = sshll.u32 %s2213_s9, 4  ;;  %s2112_s11 = int_to_ptr.vmem [resolvable:$false] %s2111_s11 }
 0x201   : > { %s2113_s21 = scalar_lea.vmem %s2112_s11, 8192  ;;  %p2114_p3 = scmp.lt.s32.totalorder %s2725_s16, %s2112_s11 }
 0x202   : > { %p2109_p6 = pnand %p2108_p1, %p2810_p2  ;;  %p2115_p4 = scmp.lt.s32.totalorder %s2113_s21, %s2107_s13 }
 0x204   : > { %p2110_p10 = pneg %p2109_p6  ;;  %p2116_p9 = por %p2115_p4, %p2114_p3 }
 0x206   : > { %p2117_p8 = pnand %p2116_p9, %p2110_p10 }
 0x263   : > { %v1047_v45 = vpop.f32.mrb[0].mxu1 }
 0x264   : > { %v1142_v47 = vadd.f32 %v2650_v43, %v1047_v45  ;;  %v1049_v48 = vpop.f32.mrb[1].mxu1 }
 0x265   : > { %v1143_v49 = vadd.f32 %v2652_v44, %v1049_v48  ;;  %v1051_v50 = vpop.f32.mrb[2].mxu1 }
 0x266   : > { %1341 = vst [vmem:[%s2658_s14] sm:$0xff] %v1142_v47  ;;  %v1144_v46 = vadd.f32 %v2650_v43, %v1051_v50  ;;  %v1053_v51 = vpop.f32.mrb[3].mxu1 }
 0x267   : > { %1342 = vst [vmem:[%s2658_s14 + $0x8] sm:$0xff] %v1143_v49  ;;  %v1145_v52 = vadd.f32 %v2652_v44, %v1053_v51 }
 0x268   : > { %1343 = vst [vmem:[%s2658_s14 + $0x10] sm:$0xff] %v1144_v46 }
 0x269   : > { %1344 = vst [vmem:[%s2658_s14 + $0x18] sm:$0xff] %v1145_v52 }
 0x26b   : > { %v1057_v53 = vpop.f32.mrb[4].mxu1 }
 0x26c   : > { %v1146_v55 = vadd.f32 %v2650_v43, %v1057_v53  ;;  %v1059_v56 = vpop.f32.mrb[5].mxu1 }
 0x26d   : > { %v1147_v57 = vadd.f32 %v2652_v44, %v1059_v56  ;;  %v1061_v58 = vpop.f32.mrb[6].mxu1 }
 0x26e   : > { %1345 = vst [vmem:[%s2658_s14 + $0x20] sm:$0xff] %v1146_v55  ;;  %v1148_v59 = vadd.f32 %v2650_v43, %v1061_v58  ;;  %v1063_v60 = vpop.f32.mrb[7].mxu1 }
 0x26f   : > { %1346 = vst [vmem:[%s2658_s14 + $0x28] sm:$0xff] %v1147_v57  ;;  %v1149_v18 = vadd.f32 %v2652_v44, %v1063_v60 }
 0x270   : > { %1347 = vst [vmem:[%s2658_s14 + $0x30] sm:$0xff] %v1148_v59 }
 0x271   : > { %1348 = vst [vmem:[%s2658_s14 + $0x38] sm:$0xff] %v1149_v18 }
 0x273   : > { %v1067_v61 = vpop.f32.mrb[8].mxu1 }
 0x274   : > { %v1150_v62 = vadd.f32 %v2650_v43, %v1067_v61  ;;  %v1069_v63 = vpop.f32.mrb[9].mxu1 }
 0x275   : > { %v1151_v0 = vadd.f32 %v2652_v44, %v1069_v63  ;;  %v1071_v1 = vpop.f32.mrb[10].mxu1 }
 0x276   : > { %1349 = vst [vmem:[%s2658_s14 + $0x40] sm:$0xff] %v1150_v62  ;;  %v1152_v2 = vadd.f32 %v2650_v43, %v1071_v1  ;;  %v1073_v3 = vpop.f32.mrb[11].mxu1 }
 0x277   : > { %1350 = vst [vmem:[%s2658_s14 + $0x48] sm:$0xff] %v1151_v0  ;;  %v1153_v4 = vadd.f32 %v2652_v44, %v1073_v3 }
 0x278   : > { %1351 = vst [vmem:[%s2658_s14 + $0x50] sm:$0xff] %v1152_v2 }
 0x279   : > { %1352 = vst [vmem:[%s2658_s14 + $0x58] sm:$0xff] %v1153_v4 }
 0x27b   : > { %v1077_v5 = vpop.f32.mrb[12].mxu1 }
 0x27c   : > { %v1154_v6 = vadd.f32 %v2650_v43, %v1077_v5  ;;  %v1079_v7 = vpop.f32.mrb[13].mxu1 }
 0x27d   : > { %v1155_v8 = vadd.f32 %v2652_v44, %v1079_v7  ;;  %v1081_v9 = vpop.f32.mrb[14].mxu1 }
 0x27e   : > { %1353 = vst [vmem:[%s2658_s14 + $0x60] sm:$0xff] %v1154_v6  ;;  %v1156_v10 = vadd.f32 %v2650_v43, %v1081_v9  ;;  %v1083_v11 = vpop.f32.mrb[15].mxu1 }
 0x27f   : > { %1354 = vst [vmem:[%s2658_s14 + $0x68] sm:$0xff] %v1155_v8  ;;  %v1157_v12 = vadd.f32 %v2652_v44, %v1083_v11 }
 0x280   : > { %1355 = vst [vmem:[%s2658_s14 + $0x70] sm:$0xff] %v1156_v10 }
 0x281   : > { %1356 = vst [vmem:[%s2658_s14 + $0x78] sm:$0xff] %v1157_v12 }
 0x283   : > { %v1087_v13 = vpop.f32.mrb[16].mxu1 }
 0x284   : > { %v1158_v14 = vadd.f32 %v2650_v43, %v1087_v13  ;;  %v1089_v15 = vpop.f32.mrb[17].mxu1 }
 0x285   : > { %v1159_v17 = vadd.f32 %v2652_v44, %v1089_v15  ;;  %v1091_v19 = vpop.f32.mrb[18].mxu1 }
 0x286   : > { %1357 = vst [vmem:[%s2658_s14 + $0x80] sm:$0xff] %v1158_v14  ;;  %v1160_v20 = vadd.f32 %v2650_v43, %v1091_v19  ;;  %v1093_v21 = vpop.f32.mrb[19].mxu1 }
 0x287   : > { %1358 = vst [vmem:[%s2658_s14 + $0x88] sm:$0xff] %v1159_v17  ;;  %v1161_v22 = vadd.f32 %v2652_v44, %v1093_v21 }
 0x288   : > { %1359 = vst [vmem:[%s2658_s14 + $0x90] sm:$0xff] %v1160_v20 }
 0x289   : > { %1360 = vst [vmem:[%s2658_s14 + $0x98] sm:$0xff] %v1161_v22 }
 0x28b   : > { %v1097_v23 = vpop.f32.mrb[20].mxu1 }
 0x28c   : > { %v1162_v24 = vadd.f32 %v2650_v43, %v1097_v23  ;;  %v1099_v25 = vpop.f32.mrb[21].mxu1 }
 0x28d   : > { %v1163_v26 = vadd.f32 %v2652_v44, %v1099_v25  ;;  %v1101_v27 = vpop.f32.mrb[22].mxu1 }
 0x28e   : > { %1361 = vst [vmem:[%s2658_s14 + $0xa0] sm:$0xff] %v1162_v24  ;;  %v1164_v28 = vadd.f32 %v2650_v43, %v1101_v27  ;;  %v1103_v29 = vpop.f32.mrb[23].mxu1 }
 0x28f   : > { %1362 = vst [vmem:[%s2658_s14 + $0xa8] sm:$0xff] %v1163_v26  ;;  %v1165_v30 = vadd.f32 %v2652_v44, %v1103_v29 }
 0x290   : > { %1363 = vst [vmem:[%s2658_s14 + $0xb0] sm:$0xff] %v1164_v28 }
 0x291   : > { %1364 = vst [vmem:[%s2658_s14 + $0xb8] sm:$0xff] %v1165_v30 }
 0x293   : > { %v1107_v31 = vpop.f32.mrb[24].mxu1 }
 0x294   : > { %v1166_v32 = vadd.f32 %v2650_v43, %v1107_v31  ;;  %v1109_v33 = vpop.f32.mrb[25].mxu1 }
 0x295   : > { %v1167_v34 = vadd.f32 %v2652_v44, %v1109_v33  ;;  %v1111_v35 = vpop.f32.mrb[26].mxu1 }
 0x296   : > { %1365 = vst [vmem:[%s2658_s14 + $0xc0] sm:$0xff] %v1166_v32  ;;  %v1168_v54 = vadd.f32 %v2650_v43, %v1111_v35  ;;  %v1113_v36 = vpop.f32.mrb[27].mxu1 }
 0x297   : > { %1366 = vst [vmem:[%s2658_s14 + $0xc8] sm:$0xff] %v1167_v34  ;;  %v1169_v16 = vadd.f32 %v2652_v44, %v1113_v36 }
 0x298   : > { %1367 = vst [vmem:[%s2658_s14 + $0xd0] sm:$0xff] %v1168_v54 }
 0x299   : > { %1368 = vst [vmem:[%s2658_s14 + $0xd8] sm:$0xff] %v1169_v16 }
 0x29b   : > { %v1117_v37 = vpop.f32.mrb[28].mxu1 }
 0x29c   : > { %v1170_v38 = vadd.f32 %v2650_v43, %v1117_v37  ;;  %v1119_v39 = vpop.f32.mrb[29].mxu1 }
 0x29d   : > { %v1171_v40 = vadd.f32 %v2652_v44, %v1119_v39  ;;  %v1121_v41 = vpop.f32.mrb[30].mxu1 }
 0x29e   : > { %1369 = vst [vmem:[%s2658_s14 + $0xe0] sm:$0xff] %v1170_v38  ;;  %v1172_v42 = vadd.f32 %v2650_v43, %v1121_v41  ;;  %v1123_v45 = vpop.f32.mrb[31].mxu1 }
 0x29f   : > { %1370 = vst [vmem:[%s2658_s14 + $0xe8] sm:$0xff] %v1171_v40  ;;  %v1173_v47 = vadd.f32 %v2652_v44, %v1123_v45 }
 0x2a0   : > { %1371 = vst [vmem:[%s2658_s14 + $0xf0] sm:$0xff] %v1172_v42 }
 0x2a1   : > { %1372 = vst [vmem:[%s2658_s14 + $0xf8] sm:$0xff] %v1173_v47 }
 0x2a2   : > { %2120 = shalt.err (!%p2117_p8)
}
 0x2a3   : > { %s2121_s8 = scalar_lea.hbm %s2723_s30, 4096  ;;  %s2125_s19 = scalar_lea.hbm %s2785_s5, 8192 }
 0x2a4   : > { %p2122_p11 = scmp.ne.s32.totalorder %s2723_s30, %s2121_s8  ;;  %p2126_p7 = scmp.lt.u32.totalorder %s2723_s30, %s2785_s5 }
 0x2a5   : > { %p2127_p12 = scmp.lt.u32.totalorder %s2125_s19, %s2121_s8  ;;  %p2129_p1 = scmp.lt.u32.totalorder %s2121_s8, %s2723_s30 }
 0x2a6   : > { %p2123_p13 = pnand %p2122_p11, %p2810_p2 }
 0x2a7   : > { %p2128_p0 = por %p2127_p12, %p2126_p7 }
 0x2a8   : > { %p2124_p5 = pneg %p2123_p13 }
 0x2a9   : > { %p2130_p6 = por %p2129_p1, %p2128_p0 }
 0x2ab   : > { %p2131_p10 = pnand %p2130_p6, %p2124_p5 }
 0x2ad   : > { %2134 = shalt.err (!%p2131_p10)
}
 0x2ae   : > { %s2214_s12 = smov 256   ;;  %s2215_s17 = smov 16  }
 0x2af   : > { %1767 = dma.vmem_to_hbm [thread:$0]  (%p2810_p2), %s2725_s16, 4096, %s2723_s30, %s1374_s27, %s2214_s12, %s2214_s12, %s2215_s17  }
 0x2b0 PF: > { %s2813_s22 = sld [smem:[#allocation17_spill]]  ;;  %s1444_s13 = sand.u32 1, %s2177_s24  }
 0x2b1   : > { %p2815_p4 = scmp.ge.s32.totalorder %s2197_s29, 2  ;;  %s1445_s9 = scalar_lea.sflag [#allocation5], %s1444_s13 }
 0x2b6   : > { %p2814_p3 = scmp.ne.s32.totalorder %s2813_s22, 0 }
 0x2b8   : > { %p1785_p9 = pnand %p2815_p4, %p2814_p3 }
 0x2ba   : > { %2168 = dma.done.wait (!%p1785_p9), %s1445_s9, 4096  }
 0x2bb   : > { %2170 = vsyncadd (!%p1785_p9), %s1445_s9, 4294963200  ;;  %s2816_s11 = sadd.s32 4294967294, %s2197_s29  }
 0x2bc   : > { %s1453_s21 = sand.u32 1, %s2816_s11  }
 0x2bd   : > { %s1454_s8 = scalar_lea.sflag [#allocation11], %s1453_s21 }
 0x2be   : > { %2172 = dma.done.wait (!%p1785_p9), %s1454_s8, 2176  }
 0x2bf   : > { %2174 = vsyncadd (!%p1785_p9), %s1454_s8, 4294965120  ;;  %s28_s29 = sadd.s32 1, %s2197_s29   ;;  %s2817_s24 = smov %s2181_s25 }
 0x2c0   : > { %p25_p2 = scmp.ge.s32.totalorder %s28_s29, 4   ;;  %s2818_s25 = smov %s2185_s26 }
 0x2c1   : > { %s2819_s26 = smov %s2396_s23  ;;  %s2820_s27 = smov %s2193_s28 }
 0x2c2   : > { %s2821_s28 = smov %s2823_s18  ;;  %27 = sbr.rel (!%p25_p2) target bundleno = 12 (0xc), region = 142 }
 0x2c9   :  { %1468 = vsyncpa [#allocation4], 1 }
 0x2ca   :  { %1470 = vsyncpa [#allocation4 + $0x1], 1 }
 0x2cb   :  { %1471 = vsyncpa [#allocation7], 1 }
 0x2cc   :  { %1472 = vsyncpa [#allocation5], 1 }
 0x2cd   :  { %1474 = vsyncpa [#allocation5 + $0x1], 1 }
 0x2ce   :  { %1475 = vsyncpa [#allocation11], 1 }
 0x2cf   :  { %1477 = vsyncpa [#allocation11 + $0x1], 1 }

// kernel: tpu_custom_call.1
= control target key start
LH: loop header
LB: loop body
LE: loop exit
PB: predicated region body
PF: predicated region fallthrough
CT: control target
= control target key end

     0   :  { %s2780_s0 = inlined_call_operand.hbm [shape: f32[256,256], index: 0, kind: input, shape index: {}]   ;;  %s2781_s1 = inlined_call_operand.hbm [shape: bf16[256,128], index: 1, kind: input, shape index: {}]   ;;  %s2782_s2 = inlined_call_operand.vmem [shape: f32[1,128], index: 2, kind: input, shape index: {}]   ;;  %s2783_s3 = inlined_call_operand.hbm [shape: bf16[128,256], index: 3, kind: input, shape index: {}]   ;;  %s2784_s4 = inlined_call_operand.vmem [shape: f32[1,256], index: 4, kind: input, shape index: {}]   ;;  %s2785_s5 = inlined_call_operand.hbm [shape: f32[256,256], index: 5, kind: output, shape index: {0}]   ;;  %s2786_s6 = inlined_call_operand.hbm [shape: f32[256,128], index: 6, kind: output, shape index: {1}]   ;;  %s2787_s7 = inlined_call_operand.hbm [shape: f32[16,128], index: 7, kind: output, shape index: {2}]  }
   0x1   :  { %2795 = sst [smem:[#allocation18_spill]] %s2780_s0 }
   0x2   :  { %2796 = sst [smem:[#allocation19_spill]] %s2781_s1 }
   0x3   :  { %13 = vsyncpa [#allocation4], 0 }
   0x4   :  { %15 = vsyncpa [#allocation4 + $0x1], 0 }
   0x5   :  { %16 = vsyncpa [#allocation7], 0 }
   0x6   :  { %17 = vsyncpa [#allocation5], 0 }
   0x7   :  { %19 = vsyncpa [#allocation5 + $0x1], 0 }
   0x8   :  { %20 = vsyncpa [#allocation11], 0 }
   0x9   :  { %22 = vsyncpa [#allocation11 + $0x1], 0  ;;  %s2256_s24 = smov 0   ;;  %s2258_s25 = smov 0  }
   0xa   :  { %s2260_s26 = smov 0   ;;  %s2262_s27 = smov 0  }
   0xb   :  { %s2264_s28 = smov 0   ;;  %s2266_s29 = smov 0  }
   0xc LB: > { %s2287_s30 = sadd.s32 4294967295, %s2197_s29   ;;  %s2789_s8 = sadd.s32 4294967294, %s2197_s29   ;;  %s2197_s29 = sphi %s2266_s29, %s28_s29   ;;  %s2193_s28 = sphi %s2264_s28, %s2821_s28   ;;  %s2189_s27 = sphi %s2262_s27, %s2820_s27   ;;  %s2185_s26 = sphi %s2260_s26, %s2819_s26   ;;  %s2181_s25 = sphi %s2258_s25, %s2818_s25   ;;  %s2177_s24 = sphi %s2256_s24, %s2817_s24  }
   0xd   : > { %p60_p0 = scmp.ne.s32.totalorder %s2181_s25, %s2177_s24  ;;  %p2788_p1 = scmp.eq.s32.totalorder %s2287_s30, 0 }
   0xe   : > { %p189_p3 = scmp.eq.s32.totalorder %s2789_s8, 1  ;;  %p1611_p5 = scmp.ge.s32.totalorder %s2197_s29, 1 }
   0xf   : > { %p2298_p4 = por %p2788_p1, %p60_p0  ;;  %p252_p7 = scmp.lt.s32.totalorder %s2197_s29, 3 }
  0x10   : > { %p2303_p6 = por %p189_p3, %p60_p0  ;;  %s2199_s12 = smov [#allocation6]  }
  0x11   : > { %s2797_s9 = scalar_select %p2298_p4, 1, 0 }
  0x12   : > { %s2798_s10 = scalar_select %p2303_p6, 1, 0 }
  0x13   : > { %p2308_p8 = pnand %p1611_p5, %p252_p7  ;;  %s266_s13 = sshll.u32 %s2199_s12, 4  ;;  %s2312_s13 = int_to_ptr.vmem [resolvable:$true] %s266_s13 }
  0x14   : > { %2799 = sst [smem:[#allocation17_spill]] %s2798_s10  ;;  %s2200_s15 = smov [#allocation8]  }
  0x15   : > { %p1773_p9 = pneg %p2308_p8  ;;  %s289_s16 = sshll.u32 %s2200_s15, 4  ;;  %s2323_s16 = int_to_ptr.vmem [resolvable:$true] %s289_s16 }
  0x16   : > { %s2802_s1 = sld [smem:[#allocation19_spill]] }
  0x17   : > { %p2319_p11 = pnand %p1773_p9, %p2788_p1 }
  0x19   : > { %p1967_p13 = pneg %p2319_p11 }
  0x1c   : > { %s1965_s19 = scalar_lea.hbm %s2802_s1, 2048 }
  0x1d   : > { %p1966_p12 = scmp.ne.s32.totalorder %s2802_s1, %s1965_s19  ;;  %p1972_p5 = scmp.lt.u32.totalorder %s1965_s19, %s2802_s1 }
  0x1f   : > { %p1968_p0 = pnand %p1967_p13, %p1966_p12 }
  0x21   : > { %p1969_p3 = pneg %p1968_p0 }
  0x23   : > { %p1974_p7 = pnand %p1972_p5, %p1969_p3 }
  0x25   : > { %1977 = shalt.err (!%p1974_p7)
}
  0x26   : > { %s1978_s12 = scalar_lea.vmem %s2312_s13, 2048  ;;  %p1986_p2 = scmp.lt.s32.totalorder %s2312_s13, %s2312_s13 }
  0x27   : > { %p1979_p9 = scmp.ne.s32.totalorder %s2312_s13, %s1978_s12  ;;  %p1987_p12 = scmp.lt.s32.totalorder %s1978_s12, %s1978_s12 }
  0x29   : > { %p1981_p10 = pnand %p1979_p9, %p1967_p13  ;;  %p1988_p0 = por %p1987_p12, %p1986_p2 }
  0x2b   : > { %p1982_p1 = pneg %p1981_p10 }
  0x2d   : > { %p1989_p6 = pnand %p1988_p0, %p1982_p1 }
  0x2f   : > { %1992 = shalt.err (!%p1989_p6)
}
  0x30   : > { %s2201_s15 = smov 64   ;;  %s2202_s17 = smov 4  }
  0x31   : > { %1776 = dma.hbm_to_vmem [thread:$0]  (!%p2319_p11), %s2802_s1, 2048, %s2312_s13, [#allocation7], %s2201_s15, %s2201_s15, %s2202_s17  }
  0x32   : > { %s1993_s22 = scalar_lea.hbm %s2783_s3, 2048 }
  0x33   : > { %p1994_p2 = scmp.ne.s32.totalorder %s2783_s3, %s1993_s22  ;;  %p2000_p10 = scmp.lt.u32.totalorder %s1993_s22, %s2783_s3 }
  0x35   : > { %p1996_p1 = pnand %p1994_p2, %p1967_p13 }
  0x37   : > { %p1997_p6 = pneg %p1996_p1 }
  0x39   : > { %p2002_p3 = pnand %p2000_p10, %p1997_p6 }
  0x3b   : > { %2005 = shalt.err (!%p2002_p3)
}
  0x3c   : > { %s2006_s13 = scalar_lea.vmem %s2323_s16, 2048  ;;  %p2014_p12 = scmp.lt.s32.totalorder %s2323_s16, %s2323_s16 }
  0x3d   : > { %p2007_p5 = scmp.ne.s32.totalorder %s2323_s16, %s2006_s13  ;;  %p2015_p0 = scmp.lt.s32.totalorder %s2006_s13, %s2006_s13 }
  0x3f   : > { %p2009_p7 = pnand %p2007_p5, %p1967_p13  ;;  %p2016_p2 = por %p2015_p0, %p2014_p12 }
  0x41   : > { %p2010_p9 = pneg %p2009_p7 }
  0x43   : > { %p2017_p1 = pnand %p2016_p2, %p2010_p9 }
  0x45   : > { %2020 = shalt.err (!%p2017_p1)
}
  0x46   : > { %s2203_s8 = smov 128   ;;  %s2204_s10 = smov 8  }
  0x47   : > { %1779 = dma.hbm_to_vmem [thread:$0]  (!%p2319_p11), %s2783_s3, 2048, %s2323_s16, [#allocation7], %s2203_s8, %s2203_s8, %s2204_s10  }
  0x48   : > { %s40_s18 = sadd.s32 1, %s2193_s28  ;;  %s47_s19 = sadd.s32 1, %s2185_s26 }
  0x49   : > { %p42_p13 = scmp.ge.s32.totalorder %s40_s18, 2  ;;  %p54_p6 = scmp.ne.s32.totalorder %s2185_s26, %s2181_s25 }
  0x4a   : > { %p55_p10 = scmp.eq.s32.totalorder %s2197_s29, 0  ;;  %p1796_p3 = scmp.lt.s32.totalorder %s2197_s29, 2 }
  0x4b   : > { %s2823_s18 = smov (%p42_p13, %s40_s18), 0  ;;  %p2803_p7 = scmp.eq.s32.totalorder %s2287_s30, 1 }
  0x4c   : > { %p56_p5 = por %p55_p10, %p54_p6  ;;  %s44_s14 = ssub.s32 %s2193_s28, %s2823_s18 }
  0x4d   : > { %p2387_p9 = por %p2803_p7, %p54_p6  ;;  %s306_s21 = sand.u32 1, %s2185_s26  }
  0x4e   : > { %p45_p12 = scmp.eq.s32.totalorder %s44_s14, 0  ;;  %s1616_s16 = sshll.u32 %s306_s21, 8 }
  0x4f   : > { %s2804_s20 = scalar_select %p2387_p9, 1, 0 }
  0x50   : > { %s1689_s22 = sshll.u32 %s2193_s28, 12  ;;  %s2805_s0 = sld [smem:[#allocation18_spill]] }
  0x51   : > { %s2396_s23 = scalar_select %p45_p12, %s2185_s26, %s47_s19  }
  0x52   : > { %s310_s10 = scalar_lea.vmem [#allocation3], %s1616_s16  ;;  %p2405_p11 = pnand %p1796_p3, %p56_p5 }
  0x53   : > { %s318_s15 = sshll.u32 %s310_s10, 4  ;;  %s2411_s19 = scalar_lea.sflag [#allocation4], %s306_s21  ;;  %s2409_s15 = int_to_ptr.vmem [resolvable:$true] %s318_s15 }
  0x54   : > { %p2023_p2 = pneg %p2405_p11 }
  0x56   : > { %s2401_s8 = scalar_lea.hbm %s2805_s0, %s1689_s22  ;;  %s2026_s12 = scalar_lea.hbm %s2805_s0, 8192 }
  0x57   : > { %s2021_s14 = scalar_lea.hbm %s2401_s8, 4096  ;;  %p2027_p6 = scmp.lt.u32.totalorder %s2401_s8, %s2805_s0 }
  0x58   : > { %p2022_p0 = scmp.ne.s32.totalorder %s2401_s8, %s2021_s14  ;;  %p2028_p10 = scmp.lt.u32.totalorder %s2026_s12, %s2021_s14 }
  0x59   : > { %p2030_p5 = scmp.lt.u32.totalorder %s2021_s14, %s2401_s8 }
  0x5a   : > { %p2024_p1 = pnand %p2023_p2, %p2022_p0  ;;  %p2029_p3 = por %p2028_p10, %p2027_p6 }
  0x5c   : > { %p2025_p13 = pneg %p2024_p1  ;;  %p2031_p7 = por %p2030_p5, %p2029_p3 }
  0x5e   : > { %p2032_p12 = pnand %p2031_p7, %p2025_p13 }
  0x60   : > { %2035 = shalt.err (!%p2032_p12)
}
  0x61   : > { %s2036_s21 = scalar_lea.vmem %s2409_s15, 4096  ;;  %s2205_s16 = smov [#allocation3]  }
  0x62   : > { %p2037_p0 = scmp.ne.s32.totalorder %s2409_s15, %s2036_s21  ;;  %s2041_s22 = sshll.u32 %s2205_s16, 4  ;;  %s2042_s22 = int_to_ptr.vmem [resolvable:$false] %s2041_s22 }
  0x63   : > { %s2043_s13 = scalar_lea.vmem %s2042_s22, 8192  ;;  %p2044_p4 = scmp.lt.s32.totalorder %s2409_s15, %s2042_s22 }
  0x64   : > { %p2039_p1 = pnand %p2037_p0, %p2023_p2  ;;  %p2045_p6 = scmp.lt.s32.totalorder %s2043_s13, %s2036_s21 }
  0x66   : > { %p2040_p9 = pneg %p2039_p1  ;;  %p2046_p10 = por %p2045_p6, %p2044_p4 }
  0x68   : > { %p2047_p3 = pnand %p2046_p10, %p2040_p9 }
  0x6a   : > { %2050 = shalt.err (!%p2047_p3)
}
  0x6b   : > { %s2206_s14 = smov 256   ;;  %s2207_s12 = smov 16  }
  0x6c   : > { %1783 = dma.hbm_to_vmem [thread:$0]  (!%p2405_p11), %s2401_s8, 4096, %s2409_s15, %s2411_s19, %s2206_s14, %s2206_s14, %s2207_s12  }
  0x6d   : > { %330 = sbr.rel (%p2308_p8) target bundleno = 688 (0x2b0), region = 40  ;;  %s2442_s10 = sand.u32 (!%p2308_p8), 1, %s2181_s25  }
  0x6e   : > { %s2793_s21 = sshll.u32 (!%p2308_p8), %s2442_s10, 8  ;;  %s333_s16 = scalar_lea.sflag (!%p2308_p8), [#allocation4], %s2442_s10 }
  0x6f   : > { %s2448_s22 = scalar_lea.vmem (!%p2308_p8), [#allocation3], %s2793_s21  ;;  %p2807_p4 = scmp.ne.s32.totalorder (!%p2308_p8), %s2797_s9, 0 }
  0x74   : > { %2160 = dma.done.wait (%p2807_p4), %s333_s16, 4096  }
  0x75   : > { %2162 = vsyncadd (%p2807_p4), %s333_s16, 4294963200  ;;  %p2808_p9 = scmp.eq.s32.totalorder %s2287_s30, 0 }
  0x77   : > { %2164 = dma.done.wait (%p2808_p9), [#allocation7], 4096   ;;  %p2809_p8 = pmov %p2808_p9 }
  0x78   : > { %v1861_v0 = vld [vmem:[#allocation6 + $0x40] sm:$0xff]   ;;  %v1863_v2 = vld [vmem:[#allocation6 + $0x48] sm:$0xff]   ;;  %v1865_v4 = vld [vmem:[#allocation6 + $0x50] sm:$0xff]   ;;  %s2794_s8 = sshll.u32 %s2189_s27, 7  ;;  %s1625_s15 = sshll.u32 %s2442_s10, 7 }
  0x79   : > { %2166 = vsyncadd (%p2809_p8), [#allocation7], 4294963200  ;;  %v1862_v1 = vld [vmem:[#allocation6] sm:$0xff]   ;;  %1693 = vmatprep.subr.bf16.mxu0 %v1861_v0  ;;  %v1864_v3 = vld [vmem:[#allocation6 + $0x8] sm:$0xff]   ;;  %s2518_s17 = scalar_lea.vmem [#allocation10], %s1625_s15  ;;  %s1626_s19 = sshll.u32 %s2442_s10, 3 }
  0x7a   : > { %1694 = vmatpush3.bf16.msra.mxu0 %v1862_v1  ;;  %v1866_v5 = vld [vmem:[#allocation6 + $0x10] sm:$0xff]   ;;  %v1867_v6 = vld [vmem:[#allocation6 + $0x58] sm:$0xff]   ;;  %v1869_v8 = vld [vmem:[#allocation6 + $0x60] sm:$0xff]   ;;  %s2582_s13 = scalar_lea.vmem [#allocation12], %s1626_s19  ;;  %s1378_s14 = sand.u32 1, %s2287_s30  }
  0x7b   : > { %1695 = vmatprep.subr.bf16.mxu0 %v1863_v2  ;;  %v1868_v7 = vld [vmem:[#allocation6 + $0x18] sm:$0xff]   ;;  %v1870_v9 = vld [vmem:[#allocation6 + $0x20] sm:$0xff]   ;;  %v1871_v10 = vld [vmem:[#allocation6 + $0x68] sm:$0xff]   ;;  %s1692_s12 = sshll.u32 %s2189_s27, 11  ;;  %s1415_s11 = sshll.u32 %s2518_s17, 4  ;;  %s2593_s11 = int_to_ptr.vmem [resolvable:$true] %s1415_s11 }
  0x7c   : > { %v397_v11 = vld [vmem:[%s2448_s22 + $0x8] sm:$0xff]  ;;  %v399_v12 = vld [vmem:[%s2448_s22 + $0x18] sm:$0xff]  ;;  %v1873_v15 = vld [vmem:[#allocation6 + $0x70] sm:$0xff]   ;;  %s2590_s9 = scalar_lea.hbm %s2786_s6, %s1692_s12  ;;  %s2595_s15 = scalar_lea.sflag [#allocation11], %s1378_s14 }
  0x7d   : > { %v429_v13 = vpack.c.bf16 %v399_v12, %v397_v11  ;;  %v1872_v14 = vld [vmem:[#allocation6 + $0x28] sm:$0xff]   ;;  %v1874_v16 = vld [vmem:[#allocation6 + $0x30] sm:$0xff]   ;;  %v1875_v17 = vld [vmem:[#allocation6 + $0x78] sm:$0xff]   ;;  %s2051_s21 = scalar_lea.vmem %s2593_s11, 2048  ;;  %p2810_p2 = scmp.ne.s32.totalorder %s2804_s20, 0 }
  0x7e   : > { %1696 = vmatpush3.bf16.msra.mxu0 %v1864_v3  ;;  %v1876_v18 = vld [vmem:[#allocation6 + $0x38] sm:$0xff]   ;;  %v396_v19 = vld [vmem:[%s2448_s22] sm:$0xff]  ;;  %v398_v20 = vld [vmem:[%s2448_s22 + $0x10] sm:$0xff]  ;;  %p2052_p11 = scmp.ne.s32.totalorder %s2593_s11, %s2051_s21  ;;  %s2209_s30 = smov [#allocation10]  }
  0x7f   : > { %1697 = vmatprep.subr.bf16.mxu0 %v1865_v4  ;;  %611 = vmatprep.mubr.bf16.mxu0 %v429_v13  ;;  %v401_v21 = vld [vmem:[%s2448_s22 + $0x28] sm:$0xff]  ;;  %v403_v22 = vld [vmem:[%s2448_s22 + $0x38] sm:$0xff]  ;;  %v428_v23 = vpack.c.bf16 %v398_v20, %v396_v19  ;;  %v400_v25 = vld [vmem:[%s2448_s22 + $0x20] sm:$0xff]  ;;  %s2055_s19 = sshll.u32 %s2209_s30, 4  ;;  %s2056_s19 = int_to_ptr.vmem [resolvable:$false] %s2055_s19 }
  0x80   : > { %v431_v24 = vpack.c.bf16 %v403_v22, %v401_v21  ;;  %v402_v26 = vld [vmem:[%s2448_s22 + $0x30] sm:$0xff]  ;;  %v405_v27 = vld [vmem:[%s2448_s22 + $0x48] sm:$0xff]  ;;  %v407_v28 = vld [vmem:[%s2448_s22 + $0x58] sm:$0xff]  ;;  %p2053_p13 = pnand %p2052_p11, %p2810_p2  ;;  %p2058_p7 = scmp.lt.s32.totalorder %s2593_s11, %s2056_s19 }
  0x81   : > { %v430_v29 = vpack.c.bf16 %v402_v26, %v400_v25  ;;  %v433_v30 = vpack.c.bf16 %v407_v28, %v405_v27  ;;  %v404_v31 = vld [vmem:[%s2448_s22 + $0x40] sm:$0xff]  ;;  %v406_v32 = vld [vmem:[%s2448_s22 + $0x50] sm:$0xff]  ;;  %v409_v33 = vld [vmem:[%s2448_s22 + $0x68] sm:$0xff] }
  0x82   : > { %1698 = vmatpush3.bf16.msra.mxu0 %v1866_v5  ;;  %v411_v34 = vld [vmem:[%s2448_s22 + $0x78] sm:$0xff]  ;;  %v432_v35 = vpack.c.bf16 %v406_v32, %v404_v31  ;;  %v408_v37 = vld [vmem:[%s2448_s22 + $0x60] sm:$0xff]  ;;  %v410_v38 = vld [vmem:[%s2448_s22 + $0x70] sm:$0xff]  ;;  %p2054_p5 = pneg %p2053_p13 }
  0x83   : > { %1699 = vmatprep.subr.bf16.mxu0 %v1867_v6  ;;  %v435_v36 = vpack.c.bf16 %v411_v34, %v409_v33  ;;  %v413_v39 = vld [vmem:[%s2448_s22 + $0x88] sm:$0xff]  ;;  %v415_v40 = vld [vmem:[%s2448_s22 + $0x98] sm:$0xff]  ;;  %v434_v41 = vpack.c.bf16 %v410_v38, %v408_v37  ;;  %v412_v43 = vld [vmem:[%s2448_s22 + $0x80] sm:$0xff]  ;;  %v789_v37 = vlaneseq }
  0x84   : > { %v437_v42 = vpack.c.bf16 %v415_v40, %v413_v39  ;;  %v414_v44 = vld [vmem:[%s2448_s22 + $0x90] sm:$0xff]  ;;  %v417_v45 = vld [vmem:[%s2448_s22 + $0xa8] sm:$0xff]  ;;  %v419_v46 = vld [vmem:[%s2448_s22 + $0xb8] sm:$0xff] }
  0x85   : > { %v436_v47 = vpack.c.bf16 %v414_v44, %v412_v43  ;;  %v439_v48 = vpack.c.bf16 %v419_v46, %v417_v45  ;;  %v416_v49 = vld [vmem:[%s2448_s22 + $0xa0] sm:$0xff]  ;;  %v418_v50 = vld [vmem:[%s2448_s22 + $0xb0] sm:$0xff]  ;;  %v421_v51 = vld [vmem:[%s2448_s22 + $0xc8] sm:$0xff]  ;;  %v2500_v46 = vshrl.u32 %v789_v37, 7 }
  0x86   : > { %1700 = vmatpush3.bf16.msra.mxu0 %v1868_v7  ;;  %v423_v52 = vld [vmem:[%s2448_s22 + $0xd8] sm:$0xff]  ;;  %v438_v53 = vpack.c.bf16 %v418_v50, %v416_v49  ;;  %v420_v55 = vld [vmem:[%s2448_s22 + $0xc0] sm:$0xff]  ;;  %v422_v56 = vld [vmem:[%s2448_s22 + $0xd0] sm:$0xff] }
  0x87   : > { %1701 = vmatprep.subr.bf16.mxu0 %v1869_v8  ;;  %v441_v54 = vpack.c.bf16 %v423_v52, %v421_v51  ;;  %v425_v57 = vld [vmem:[%s2448_s22 + $0xe8] sm:$0xff]  ;;  %v427_v58 = vld [vmem:[%s2448_s22 + $0xf8] sm:$0xff]  ;;  %v440_v59 = vpack.c.bf16 %v422_v56, %v420_v55  ;;  %v424_v61 = vld [vmem:[%s2448_s22 + $0xe0] sm:$0xff] }
  0x88   : > { %v443_v60 = vpack.c.bf16 %v427_v58, %v425_v57  ;;  %v426_v62 = vld [vmem:[%s2448_s22 + $0xf0] sm:$0xff]  ;;  %v1877_v0 = vld [vmem:[#allocation8 + $0x4] ss:$8 sps:$4 sm:$0xff]   ;;  %v1879_v1 = vld [vmem:[#allocation8] ss:$8 sps:$4 sm:$0xff]  }
  0x89   : > { %v442_v63 = vpack.c.bf16 %v426_v62, %v424_v61  ;;  %1013 = vmatprep.subr.bf16.mxu1 %v1877_v0  ;;  %v1880_v2 = vld [vmem:[#allocation8 + $0x14] ss:$8 sps:$4 sm:$0xff]   ;;  %v1882_v3 = vld [vmem:[#allocation8 + $0x10] ss:$8 sps:$4 sm:$0xff]   ;;  %v1883_v4 = vld [vmem:[#allocation8 + $0x24] ss:$8 sps:$4 sm:$0xff]  }
  0x8a   : > { %1702 = vmatpush3.bf16.msra.mxu0 %v1870_v9  ;;  %1014 = vmatpush1.bf16.msra.mxu1 %v1879_v1  ;;  %v1885_v5 = vld [vmem:[#allocation8 + $0x20] ss:$8 sps:$4 sm:$0xff]   ;;  %v1886_v6 = vld [vmem:[#allocation8 + $0x34] ss:$8 sps:$4 sm:$0xff]   ;;  %v1888_v7 = vld [vmem:[#allocation8 + $0x30] ss:$8 sps:$4 sm:$0xff]  }
  0x8b   : > { %1703 = vmatprep.subr.bf16.mxu0 %v1871_v10  ;;  %1015 = vmatprep.subr.bf16.mxu1 %v1880_v2  ;;  %v1889_v8 = vld [vmem:[#allocation8 + $0x44] ss:$8 sps:$4 sm:$0xff]   ;;  %v1891_v9 = vld [vmem:[#allocation8 + $0x40] ss:$8 sps:$4 sm:$0xff]   ;;  %v1892_v10 = vld [vmem:[#allocation8 + $0x54] ss:$8 sps:$4 sm:$0xff]  }
  0x8c   : > { %v1894_v11 = vld [vmem:[#allocation8 + $0x50] ss:$8 sps:$4 sm:$0xff]   ;;  %v1895_v12 = vld [vmem:[#allocation8 + $0x64] ss:$8 sps:$4 sm:$0xff]   ;;  %v1897_v13 = vld [vmem:[#allocation8 + $0x60] ss:$8 sps:$4 sm:$0xff]  }
  0x8e   : > { %1704 = vmatpush3.bf16.msra.mxu0 %v1872_v14  ;;  %1016 = vmatpush1.bf16.msra.mxu1 %v1882_v3  ;;  %v1898_v14 = vld [vmem:[#allocation8 + $0x74] ss:$8 sps:$4 sm:$0xff]  }
  0x8f   : > { %1705 = vmatprep.subr.bf16.mxu0 %v1873_v15  ;;  %1017 = vmatprep.subr.bf16.mxu1 %v1883_v4  ;;  %v1900_v15 = vld [vmem:[#allocation8 + $0x70] ss:$8 sps:$4 sm:$0xff]  }
  0x92   : > { %1706 = vmatpush3.bf16.msra.mxu0 %v1874_v16  ;;  %1018 = vmatpush1.bf16.msra.mxu1 %v1885_v5  ;;  %v2208_v16 = vmov 0   ;;  %v792_v5 = vadd.s32 16, %v2500_v46 }
  0x93   : > { %1707 = vmatprep.subr.bf16.mxu0 %v1875_v17  ;;  %1019 = vmatprep.subr.bf16.mxu1 %v1886_v6 }
  0x94   : > { %1045 = vmatprep.mubr.bf16.mxu1 %v2208_v16 }
  0x96   : > { %1708 = vmatpush3.bf16.msra.mxu0 %v1876_v18  ;;  %1020 = vmatpush1.bf16.msra.mxu1 %v1888_v7  ;;  %v2494_v18 = vld [vmem:[%s2782_s2] ss:$0 sm:$0xff] }
  0x97   : > { %1021 = vmatprep.subr.bf16.mxu1 %v1889_v8 }
  0x99   : > { %612 = vmatmul.mubr.bf16.vlgmr.msra.gmra.mrb[0].mxu0 %v428_v23 }
  0x9a   : > { %619 = vmatprep.mubr.bf16.mxu0 %v431_v24  ;;  %1022 = vmatpush1.bf16.msra.mxu1 %v1891_v9  ;;  %v793_v9 = vadd.s32 24, %v2500_v46 }
  0x9b   : > { %1023 = vmatprep.subr.bf16.mxu1 %v1892_v10 }
  0x9e   : > { %1024 = vmatpush1.bf16.msra.mxu1 %v1894_v11 }
  0x9f   : > { %1025 = vmatprep.subr.bf16.mxu1 %v1895_v12 }
  0xa1   : > { %620 = vmatmul.mubr.bf16.gmra.mrb[4].mxu0 %v430_v29 }
  0xa2   : > { %627 = vmatprep.mubr.bf16.mxu0 %v433_v30  ;;  %1026 = vmatpush1.bf16.msra.mxu1 %v1897_v13 }
  0xa3   : > { %1027 = vmatprep.subr.bf16.mxu1 %v1898_v14 }
  0xa6   : > { %1028 = vmatpush1.bf16.msra.mxu1 %v1900_v15 }
  0xa9   : > { %628 = vmatmul.mubr.bf16.gmra.mrb[8].mxu0 %v432_v35 }
  0xaa   : > { %635 = vmatprep.mubr.bf16.mxu0 %v435_v36 }
  0xb1   : > { %636 = vmatmul.mubr.bf16.gmra.mrb[12].mxu0 %v434_v41 }
  0xb2   : > { %643 = vmatprep.mubr.bf16.mxu0 %v437_v42 }
  0xb9   : > { %644 = vmatmul.mubr.bf16.gmra.mrb[16].mxu0 %v436_v47 }
  0xba   : > { %651 = vmatprep.mubr.bf16.mxu0 %v439_v48 }
  0xc1   : > { %652 = vmatmul.mubr.bf16.gmra.mrb[20].mxu0 %v438_v53  ;;  %v791_v53 = vadd.s32 8, %v2500_v46 }
  0xc2   : > { %659 = vmatprep.mubr.bf16.mxu0 %v441_v54  ;;  %v2508_v54 = vstv %s2794_s8  ;;  %s2057_s8 = scalar_lea.vmem %s2056_s19, 4096 }
  0xc3   : > { %v807_v61 = vadd.s32 %v2508_v54, %v2500_v46  ;;  %v808_v0 = vadd.s32 %v2508_v54, %v791_v53  ;;  %v809_v14 = vadd.s32 %v2508_v54, %v792_v5  ;;  %p2059_p12 = scmp.lt.s32.totalorder %s2057_s8, %s2051_s21 }
  0xc5   : > { %vm823_vm0 = vcmp.lt.s32.totalorder %v807_v61, 256  ;;  %vm824_vm1 = vcmp.lt.s32.totalorder %v808_v0, 256  ;;  %vm825_vm2 = vcmp.lt.s32.totalorder %v809_v14, 256  ;;  %p2060_p0 = por %p2059_p12, %p2058_p7 }
  0xc7   : > { %p2061_p1 = pnand %p2060_p0, %p2054_p5 }
  0xc9   : > { %660 = vmatmul.mubr.bf16.gmra.mrb[24].mxu0 %v440_v59 }
  0xca   : > { %667 = vmatprep.mubr.bf16.mxu0 %v443_v60 }
  0xd1   : > { %668 = vmatmul.mubr.bf16.gmra.mrb[28].mxu0 %v442_v63 }
 0x16c   : > { %v1709_v17 = vpop.f32.mrb[0].mxu0 }
 0x16d   : > { %v1710_v19 = vpop.f32.mrb[1].mxu0 }
 0x16e   : > { %v1711_v20 = vadd.f32 %v1710_v19, %v1709_v17  ;;  %v1712_v21 = vpop.f32.mrb[2].mxu0 }
 0x16f   : > { %v1713_v22 = vpop.f32.mrb[3].mxu0 }
 0x170   : > { %v614_v23 = vadd.f32 %v1711_v20, %v2494_v18  ;;  %v1714_v24 = vadd.f32 %v1713_v22, %v1712_v21 }
 0x172   : > { %v1644_v25 = vmul.f32 -1.442695, %v614_v23  ;;  %v617_v26 = vadd.f32 %v1714_v24, %v2494_v18 }
 0x174   : > { %1901 = vpow2.f32 %v1644_v25  ;;  %v1645_v27 = vmul.f32 -1.442695, %v617_v26  ;;  %v1715_v28 = vpop.f32.mrb[4].mxu0  ;;  %v810_v25 = vadd.s32 %v2508_v54, %v793_v9 }
 0x175   : > { %v1716_v29 = vpop.f32.mrb[5].mxu0 }
 0x176   : > { %1903 = vpow2.f32 %v1645_v27  ;;  %v1717_v30 = vadd.f32 %v1716_v29, %v1715_v28  ;;  %v1718_v31 = vpop.f32.mrb[6].mxu0  ;;  %vm826_vm3 = vcmp.lt.s32.totalorder %v810_v25, 256  ;;  %v799_v25 = vadd.s32 72, %v2500_v46 }
 0x177   : > { %v1719_v32 = vpop.f32.mrb[7].mxu0 }
 0x178   : > { %v622_v33 = vadd.f32 %v1717_v30, %v2494_v18  ;;  %v1720_v34 = vadd.f32 %v1719_v32, %v1718_v31  ;;  %v794_v31 = vadd.s32 32, %v2500_v46 }
 0x17a   : > { %v1646_v35 = vmul.f32 -1.442695, %v622_v33  ;;  %v625_v36 = vadd.f32 %v1720_v34, %v2494_v18 }
 0x17c   : > { %1905 = vpow2.f32 %v1646_v35  ;;  %v1647_v38 = vmul.f32 -1.442695, %v625_v36  ;;  %v1721_v39 = vpop.f32.mrb[8].mxu0  ;;  %v795_v35 = vadd.s32 40, %v2500_v46 }
 0x17d   : > { %v1722_v40 = vpop.f32.mrb[9].mxu0 }
 0x17e   : > { %v1902_v41 = vpop.eup %1901  ;;  %1907 = vpow2.f32 %v1647_v38  ;;  %v1723_v42 = vadd.f32 %v1722_v40, %v1721_v39  ;;  %v1724_v43 = vpop.f32.mrb[10].mxu0 }
 0x17f   : > { %v724_v44 = vadd.f32 1.0, %v1902_v41  ;;  %v1725_v45 = vpop.f32.mrb[11].mxu0  ;;  %v811_v41 = vadd.s32 %v2508_v54, %v794_v31 }
 0x180   : > { %v1904_v47 = vpop.eup %1903  ;;  %v630_v48 = vadd.f32 %v1723_v42, %v2494_v18  ;;  %v1726_v49 = vadd.f32 %v1725_v45, %v1724_v43 }
 0x181   : > { %1909 = vrcp.f32 %v724_v44  ;;  %v725_v50 = vadd.f32 1.0, %v1904_v47  ;;  %vm827_vm4 = vcmp.lt.s32.totalorder %v811_v41, 256 }
 0x182   : > { %v1648_v51 = vmul.f32 -1.442695, %v630_v48  ;;  %v633_v52 = vadd.f32 %v1726_v49, %v2494_v18 }
 0x183   : > { %1911 = vrcp.f32 %v725_v50 }
 0x184   : > { %1913 = vpow2.f32 %v1648_v51  ;;  %v1649_v55 = vmul.f32 -1.442695, %v633_v52  ;;  %v1727_v56 = vpop.f32.mrb[12].mxu0  ;;  %v812_v51 = vadd.s32 %v2508_v54, %v795_v35 }
 0x185   : > { %v1728_v57 = vpop.f32.mrb[13].mxu0 }
 0x186   : > { %v1906_v58 = vpop.eup %1905  ;;  %1915 = vpow2.f32 %v1649_v55  ;;  %v1729_v59 = vadd.f32 %v1728_v57, %v1727_v56  ;;  %v1730_v60 = vpop.f32.mrb[14].mxu0  ;;  %vm828_vm5 = vcmp.lt.s32.totalorder %v812_v51, 256  ;;  %v801_v51 = vadd.s32 88, %v2500_v46 }
 0x187   : > { %v726_v62 = vadd.f32 1.0, %v1906_v58  ;;  %v1731_v63 = vpop.f32.mrb[15].mxu0  ;;  %v796_v58 = vadd.s32 48, %v2500_v46 }
 0x188   : > { %v1908_v1 = vpop.eup %1907  ;;  %v638_v2 = vadd.f32 %v1729_v59, %v2494_v18  ;;  %v1732_v3 = vadd.f32 %v1731_v63, %v1730_v60 }
 0x189   : > { %1917 = vrcp.f32 %v726_v62  ;;  %v727_v4 = vadd.f32 1.0, %v1908_v1  ;;  %v797_v62 = vadd.s32 56, %v2500_v46 }
 0x18a   : > { %v1650_v6 = vmul.f32 -1.442695, %v638_v2  ;;  %v641_v7 = vadd.f32 %v1732_v3, %v2494_v18 }
 0x18b   : > { %v1910_v8 = vpop.eup %1909  ;;  %1919 = vrcp.f32 %v727_v4  ;;  %v813_v4 = vadd.s32 %v2508_v54, %v796_v58 }
 0x18c   : > { %772 = vst [vmem:[%s2518_s17] sm:$0xff] %v1910_v8  ;;  %1921 = vpow2.f32 %v1650_v6  ;;  %v1651_v10 = vmul.f32 -1.442695, %v641_v7  ;;  %v1733_v11 = vpop.f32.mrb[16].mxu0  ;;  %v871_v15 = vsel %vm823_vm0, %v1910_v8, 0.0 }
 0x18d   : > { %v1912_v12 = vpop.eup %1911  ;;  %v1734_v13 = vpop.f32.mrb[17].mxu0  ;;  %vm829_vm6 = vcmp.lt.s32.totalorder %v813_v4, 256 }
 0x18e   : > { %v1914_v17 = vpop.eup %1913  ;;  %773 = vst [vmem:[%s2518_s17 + $0x8] sm:$0xff] %v1912_v12  ;;  %1923 = vpow2.f32 %v1651_v10  ;;  %v1735_v19 = vadd.f32 %v1734_v13, %v1733_v11  ;;  %v1736_v20 = vpop.f32.mrb[18].mxu0  ;;  %v909_v21 = vpack.c.bf16 %v1912_v12, %v1910_v8  ;;  %v872_v22 = vsel %vm824_vm1, %v1912_v12, 0.0 }
 0x18f   : > { %v728_v23 = vadd.f32 1.0, %v1914_v17  ;;  %v1737_v24 = vpop.f32.mrb[19].mxu0  ;;  %v887_v26 = vadd.f32 %v872_v22, %v871_v15  ;;  %v814_v13 = vadd.s32 %v2508_v54, %v797_v62 }
 0x190   : > { %v1916_v27 = vpop.eup %1915  ;;  %v646_v28 = vadd.f32 %v1735_v19, %v2494_v18  ;;  %v1738_v29 = vadd.f32 %v1737_v24, %v1736_v20  ;;  %1046 = vmatmul.mubr.bf16.vlgmr.msra.gmra.mrb[0].mxu1 %v909_v21  ;;  %v798_v21 = vadd.s32 64, %v2500_v46 }
 0x191   : > { %1925 = vrcp.f32 %v728_v23  ;;  %v729_v30 = vadd.f32 1.0, %v1916_v27  ;;  %1055 = vmatprep.mubr.bf16.mxu1 %v2208_v16  ;;  %vm830_vm7 = vcmp.lt.s32.totalorder %v814_v13, 256 }
 0x192   : > { %v1652_v32 = vmul.f32 -1.442695, %v646_v28  ;;  %v649_v33 = vadd.f32 %v1738_v29, %v2494_v18  ;;  %v815_v31 = vadd.s32 %v2508_v54, %v798_v21 }
 0x193   : > { %v1918_v34 = vpop.eup %1917  ;;  %1927 = vrcp.f32 %v729_v30 }
 0x194   : > { %774 = vst [vmem:[%s2518_s17 + $0x10] sm:$0xff] %v1918_v34  ;;  %1929 = vpow2.f32 %v1652_v32  ;;  %v1653_v36 = vmul.f32 -1.442695, %v649_v33  ;;  %v1739_v37 = vpop.f32.mrb[20].mxu0  ;;  %v873_v38 = vsel %vm825_vm2, %v1918_v34, 0.0  ;;  %vm831_vm8 = vcmp.lt.s32.totalorder %v815_v31, 256 }
 0x195   : > { %v1920_v39 = vpop.eup %1919  ;;  %v1740_v40 = vpop.f32.mrb[21].mxu0  ;;  %v888_v42 = vadd.f32 %v887_v26, %v873_v38 }
 0x196   : > { %v1922_v43 = vpop.eup %1921  ;;  %775 = vst [vmem:[%s2518_s17 + $0x18] sm:$0xff] %v1920_v39  ;;  %1931 = vpow2.f32 %v1653_v36  ;;  %v1741_v44 = vadd.f32 %v1740_v40, %v1739_v37  ;;  %v1742_v45 = vpop.f32.mrb[22].mxu0  ;;  %v910_v47 = vpack.c.bf16 %v1920_v39, %v1918_v34  ;;  %v874_v48 = vsel %vm826_vm3, %v1920_v39, 0.0 }
 0x197   : > { %v730_v49 = vadd.f32 1.0, %v1922_v43  ;;  %v1743_v50 = vpop.f32.mrb[23].mxu0  ;;  %v889_v52 = vadd.f32 %v888_v42, %v874_v48  ;;  %v816_v40 = vadd.s32 %v2508_v54, %v799_v25 }
 0x198   : > { %v1924_v53 = vpop.eup %1923  ;;  %v654_v55 = vadd.f32 %v1741_v44, %v2494_v18  ;;  %v1744_v56 = vadd.f32 %v1743_v50, %v1742_v45  ;;  %1056 = vmatmul.mubr.bf16.gmra.mrb[4].mxu1 %v910_v47  ;;  %v800_v47 = vadd.s32 80, %v2500_v46 }
 0x199   : > { %1933 = vrcp.f32 %v730_v49  ;;  %v731_v57 = vadd.f32 1.0, %v1924_v53  ;;  %1065 = vmatprep.mubr.bf16.mxu1 %v2208_v16  ;;  %vm832_vm9 = vcmp.lt.s32.totalorder %v816_v40, 256 }
 0x19a   : > { %v1654_v59 = vmul.f32 -1.442695, %v654_v55  ;;  %v657_v60 = vadd.f32 %v1744_v56, %v2494_v18  ;;  %v817_v56 = vadd.s32 %v2508_v54, %v800_v47 }
 0x19b   : > { %v1926_v61 = vpop.eup %1925  ;;  %1935 = vrcp.f32 %v731_v57 }
 0x19c   : > { %776 = vst [vmem:[%s2518_s17 + $0x20] sm:$0xff] %v1926_v61  ;;  %1937 = vpow2.f32 %v1654_v59  ;;  %v1655_v63 = vmul.f32 -1.442695, %v657_v60  ;;  %v1745_v0 = vpop.f32.mrb[24].mxu0  ;;  %v875_v1 = vsel %vm827_vm4, %v1926_v61, 0.0  ;;  %vm833_vm10 = vcmp.lt.s32.totalorder %v817_v56, 256 }
 0x19d   : > { %v1928_v2 = vpop.eup %1927  ;;  %v1746_v3 = vpop.f32.mrb[25].mxu0  ;;  %v890_v5 = vadd.f32 %v889_v52, %v875_v1  ;;  %v802_v1 = vadd.s32 96, %v2500_v46 }
 0x19e   : > { %v1930_v6 = vpop.eup %1929  ;;  %777 = vst [vmem:[%s2518_s17 + $0x28] sm:$0xff] %v1928_v2  ;;  %1939 = vpow2.f32 %v1655_v63  ;;  %v1747_v7 = vadd.f32 %v1746_v3, %v1745_v0  ;;  %v1748_v8 = vpop.f32.mrb[26].mxu0  ;;  %v911_v9 = vpack.c.bf16 %v1928_v2, %v1926_v61  ;;  %v876_v10 = vsel %vm828_vm5, %v1928_v2, 0.0 }
 0x19f   : > { %v732_v11 = vadd.f32 1.0, %v1930_v6  ;;  %v1749_v12 = vpop.f32.mrb[27].mxu0  ;;  %v891_v14 = vadd.f32 %v890_v5, %v876_v10  ;;  %v818_v61 = vadd.s32 %v2508_v54, %v801_v51  ;;  %v803_v3 = vadd.s32 104, %v2500_v46 }
 0x1a0   : > { %v1932_v15 = vpop.eup %1931  ;;  %v662_v17 = vadd.f32 %v1747_v7, %v2494_v18  ;;  %v1750_v19 = vadd.f32 %v1749_v12, %v1748_v8  ;;  %1066 = vmatmul.mubr.bf16.gmra.mrb[8].mxu1 %v911_v9  ;;  %v819_v6 = vadd.s32 %v2508_v54, %v802_v1 }
 0x1a1   : > { %1941 = vrcp.f32 %v732_v11  ;;  %v733_v20 = vadd.f32 1.0, %v1932_v15  ;;  %1075 = vmatprep.mubr.bf16.mxu1 %v2208_v16  ;;  %vm834_vm11 = vcmp.lt.s32.totalorder %v818_v61, 256  ;;  %v820_v12 = vadd.s32 %v2508_v54, %v803_v3 }
 0x1a2   : > { %v1656_v22 = vmul.f32 -1.442695, %v662_v17  ;;  %v665_v23 = vadd.f32 %v1750_v19, %v2494_v18  ;;  %v804_v17 = vadd.s32 112, %v2500_v46  ;;  %vm835_vm12 = vcmp.lt.s32.totalorder %v819_v6, 256 }
 0x1a3   : > { %v1934_v24 = vpop.eup %1933  ;;  %1943 = vrcp.f32 %v733_v20  ;;  %v805_v20 = vadd.s32 120, %v2500_v46  ;;  %vm836_vm13 = vcmp.lt.s32.totalorder %v820_v12, 256 }
 0x1a4   : > { %778 = vst [vmem:[%s2518_s17 + $0x30] sm:$0xff] %v1934_v24  ;;  %1945 = vpow2.f32 %v1656_v22  ;;  %v1657_v26 = vmul.f32 -1.442695, %v665_v23  ;;  %v1751_v27 = vpop.f32.mrb[28].mxu0  ;;  %v877_v28 = vsel %vm829_vm6, %v1934_v24, 0.0  ;;  %v821_v23 = vadd.s32 %v2508_v54, %v804_v17 }
 0x1a5   : > { %v1936_v29 = vpop.eup %1935  ;;  %v1752_v30 = vpop.f32.mrb[29].mxu0  ;;  %v892_v32 = vadd.f32 %v891_v14, %v877_v28 }
 0x1a6   : > { %v1938_v33 = vpop.eup %1937  ;;  %779 = vst [vmem:[%s2518_s17 + $0x38] sm:$0xff] %v1936_v29  ;;  %1947 = vpow2.f32 %v1657_v26  ;;  %v1753_v34 = vadd.f32 %v1752_v30, %v1751_v27  ;;  %v1754_v35 = vpop.f32.mrb[30].mxu0  ;;  %v912_v36 = vpack.c.bf16 %v1936_v29, %v1934_v24  ;;  %v878_v37 = vsel %vm830_vm7, %v1936_v29, 0.0 }
 0x1a7   : > { %v734_v38 = vadd.f32 1.0, %v1938_v33  ;;  %v1755_v39 = vpop.f32.mrb[31].mxu0  ;;  %v893_v41 = vadd.f32 %v892_v32, %v878_v37  ;;  %v822_v27 = vadd.s32 %v2508_v54, %v805_v20  ;;  %vm837_vm14 = vcmp.lt.s32.totalorder %v821_v23, 256 }
 0x1a8   : > { %v1940_v42 = vpop.eup %1939  ;;  %v670_v43 = vadd.f32 %v1753_v34, %v2494_v18  ;;  %v1756_v44 = vadd.f32 %v1755_v39, %v1754_v35  ;;  %1076 = vmatmul.mubr.bf16.gmra.mrb[12].mxu1 %v912_v36 }
 0x1a9   : > { %1949 = vrcp.f32 %v734_v38  ;;  %v735_v45 = vadd.f32 1.0, %v1940_v42  ;;  %1085 = vmatprep.mubr.bf16.mxu1 %v2208_v16  ;;  %vm838_vm15 = vcmp.lt.s32.totalorder %v822_v27, 256 }
 0x1aa   : > { %v1658_v48 = vmul.f32 -1.442695, %v670_v43  ;;  %v673_v49 = vadd.f32 %v1756_v44, %v2494_v18 }
 0x1ab   : > { %v1942_v50 = vpop.eup %1941  ;;  %1951 = vrcp.f32 %v735_v45 }
 0x1ac   : > { %780 = vst [vmem:[%s2518_s17 + $0x40] sm:$0xff] %v1942_v50  ;;  %1953 = vpow2.f32 %v1658_v48  ;;  %v1659_v52 = vmul.f32 -1.442695, %v673_v49  ;;  %v879_v53 = vsel %vm831_vm8, %v1942_v50, 0.0 }
 0x1ad   : > { %v1944_v55 = vpop.eup %1943  ;;  %v894_v57 = vadd.f32 %v893_v41, %v879_v53 }
 0x1ae   : > { %v1946_v58 = vpop.eup %1945  ;;  %781 = vst [vmem:[%s2518_s17 + $0x48] sm:$0xff] %v1944_v55  ;;  %1955 = vpow2.f32 %v1659_v52  ;;  %v913_v59 = vpack.c.bf16 %v1944_v55, %v1942_v50  ;;  %v880_v60 = vsel %vm832_vm9, %v1944_v55, 0.0 }
 0x1af   : > { %v736_v18 = vadd.f32 1.0, %v1946_v58  ;;  %v895_v62 = vadd.f32 %v894_v57, %v880_v60 }
 0x1b0   : > { %v1948_v63 = vpop.eup %1947  ;;  %1086 = vmatmul.mubr.bf16.gmra.mrb[16].mxu1 %v913_v59 }
 0x1b1   : > { %1957 = vrcp.f32 %v736_v18  ;;  %v737_v0 = vadd.f32 1.0, %v1948_v63  ;;  %1095 = vmatprep.mubr.bf16.mxu1 %v2208_v16 }
 0x1b3   : > { %v1950_v2 = vpop.eup %1949  ;;  %1959 = vrcp.f32 %v737_v0 }
 0x1b4   : > { %782 = vst [vmem:[%s2518_s17 + $0x50] sm:$0xff] %v1950_v2  ;;  %v881_v4 = vsel %vm833_vm10, %v1950_v2, 0.0 }
 0x1b5   : > { %v1952_v5 = vpop.eup %1951  ;;  %v896_v7 = vadd.f32 %v895_v62, %v881_v4 }
 0x1b6   : > { %v1954_v8 = vpop.eup %1953  ;;  %783 = vst [vmem:[%s2518_s17 + $0x58] sm:$0xff] %v1952_v5  ;;  %v914_v9 = vpack.c.bf16 %v1952_v5, %v1950_v2  ;;  %v882_v10 = vsel %vm834_vm11, %v1952_v5, 0.0 }
 0x1b7   : > { %v738_v11 = vadd.f32 1.0, %v1954_v8  ;;  %v897_v13 = vadd.f32 %v896_v7, %v882_v10 }
 0x1b8   : > { %v1956_v14 = vpop.eup %1955  ;;  %1096 = vmatmul.mubr.bf16.gmra.mrb[20].mxu1 %v914_v9 }
 0x1b9   : > { %1961 = vrcp.f32 %v738_v11  ;;  %v739_v15 = vadd.f32 1.0, %v1956_v14  ;;  %1105 = vmatprep.mubr.bf16.mxu1 %v2208_v16 }
 0x1bb   : > { %v1958_v19 = vpop.eup %1957  ;;  %1963 = vrcp.f32 %v739_v15 }
 0x1bc   : > { %784 = vst [vmem:[%s2518_s17 + $0x60] sm:$0xff] %v1958_v19  ;;  %v883_v21 = vsel %vm835_vm12, %v1958_v19, 0.0 }
 0x1bd   : > { %v1960_v22 = vpop.eup %1959  ;;  %v898_v24 = vadd.f32 %v897_v13, %v883_v21 }
 0x1be   : > { %785 = vst [vmem:[%s2518_s17 + $0x68] sm:$0xff] %v1960_v22  ;;  %v915_v25 = vpack.c.bf16 %v1960_v22, %v1958_v19  ;;  %v884_v26 = vsel %vm836_vm13, %v1960_v22, 0.0 }
 0x1bf   : > { %v899_v28 = vadd.f32 %v898_v24, %v884_v26 }
 0x1c0   : > { %1106 = vmatmul.mubr.bf16.gmra.mrb[24].mxu1 %v915_v25 }
 0x1c1   : > { %1115 = vmatprep.mubr.bf16.mxu1 %v2208_v16 }
 0x1c3   : > { %v1962_v29 = vpop.eup %1961 }
 0x1c4   : > { %786 = vst [vmem:[%s2518_s17 + $0x70] sm:$0xff] %v1962_v29  ;;  %v885_v30 = vsel %vm837_vm14, %v1962_v29, 0.0 }
 0x1c5   : > { %v1964_v31 = vpop.eup %1963  ;;  %v900_v32 = vadd.f32 %v899_v28, %v885_v30 }
 0x1c6   : > { %787 = vst [vmem:[%s2518_s17 + $0x78] sm:$0xff] %v1964_v31  ;;  %v916_v33 = vpack.c.bf16 %v1964_v31, %v1962_v29  ;;  %v886_v34 = vsel %vm838_vm15, %v1964_v31, 0.0 }
 0x1c7   : > { %v901_v35 = vadd.f32 %v900_v32, %v886_v34 }
 0x1c8   : > { %1116 = vmatmul.mubr.bf16.gmra.mrb[28].mxu1 %v916_v33 }
 0x1c9   : > { %v902_v54 = vrot.slane %v901_v35, 4 }
 0x1cb   : > { %v903_v36 = vadd.f32 %v902_v54, %v901_v35 }
 0x1cd   : > { %v904_v16 = vrot.slane %v903_v36, 2 }
 0x1cf   : > { %v905_v37 = vadd.f32 %v904_v16, %v903_v36 }
 0x1d1   : > { %v906_v38 = vrot.slane %v905_v37, 1 }
 0x1d3   : > { %v907_v39 = vadd.f32 %v906_v38, %v905_v37 }
 0x1d5   : > { %908 = vst [vmem:[%s2582_s13] sm:$0xff] %v907_v39 }
 0x1d6   : > { %2064 = shalt.err (!%p2061_p1)
}
 0x1d7   : > { %s2065_s17 = scalar_lea.hbm %s2590_s9, 2048  ;;  %s2069_s16 = scalar_lea.hbm %s2786_s6, 4096 }
 0x1d8   : > { %p2066_p6 = scmp.ne.s32.totalorder %s2590_s9, %s2065_s17  ;;  %p2070_p4 = scmp.lt.u32.totalorder %s2590_s9, %s2786_s6 }
 0x1d9   : > { %p2071_p9 = scmp.lt.u32.totalorder %s2069_s16, %s2065_s17  ;;  %p2073_p11 = scmp.lt.u32.totalorder %s2065_s17, %s2590_s9 }
 0x1da   : > { %p2067_p10 = pnand %p2066_p6, %p2810_p2 }
 0x1db   : > { %p2072_p8 = por %p2071_p9, %p2070_p4 }
 0x1dc   : > { %p2068_p3 = pneg %p2067_p10 }
 0x1dd   : > { %p2074_p13 = por %p2073_p11, %p2072_p8 }
 0x1df   : > { %p2075_p5 = pnand %p2074_p13, %p2068_p3 }
 0x1e1   : > { %2078 = shalt.err (!%p2075_p5)
}
 0x1e2   : > { %s2210_s21 = smov 128   ;;  %s2211_s8 = smov 8  }
 0x1e3   : > { %1768 = dma.vmem_to_hbm [thread:$0]  (%p2810_p2), %s2593_s11, 2048, %s2590_s9, %s2595_s15, %s2210_s21, %s2210_s21, %s2211_s8  }
 0x1e4   : > { %s2811_s19 = sshll.u32 %s2189_s27, 7  ;;  %s1432_s17 = sshll.u32 %s2582_s13, 4  ;;  %s1433_s17 = int_to_ptr.vmem [resolvable:$true] %s1432_s17 }
 0x1e5   : > { %s2624_s16 = scalar_lea.hbm %s2787_s7, %s2811_s19  ;;  %s2079_s22 = scalar_lea.vmem %s1433_s17, 128 }
 0x1e6   : > { %p2080_p7 = scmp.ne.s32.totalorder %s1433_s17, %s2079_s22  ;;  %s2212_s30 = smov [#allocation12]  }
 0x1e7   : > { %s2083_s0 = sshll.u32 %s2212_s30, 4  ;;  %s2084_s0 = int_to_ptr.vmem [resolvable:$false] %s2083_s0 }
 0x1e8   : > { %p2081_p12 = pnand %p2080_p7, %p2810_p2  ;;  %s2085_s1 = scalar_lea.vmem %s2084_s0, 256 }
 0x1e9   : > { %p2086_p1 = scmp.lt.s32.totalorder %s1433_s17, %s2084_s0  ;;  %p2087_p6 = scmp.lt.s32.totalorder %s2085_s1, %s2079_s22 }
 0x1ea   : > { %p2082_p0 = pneg %p2081_p12 }
 0x1eb   : > { %p2088_p10 = por %p2087_p6, %p2086_p1 }
 0x1ed   : > { %p2089_p3 = pnand %p2088_p10, %p2082_p0 }
 0x1ef   : > { %2092 = shalt.err (!%p2089_p3)
}
 0x1f0   : > { %s2093_s13 = scalar_lea.hbm %s2624_s16, 128  ;;  %s2097_s21 = scalar_lea.hbm %s2787_s7, 256 }
 0x1f1   : > { %p2094_p4 = scmp.ne.s32.totalorder %s2624_s16, %s2093_s13  ;;  %p2098_p11 = scmp.lt.u32.totalorder %s2624_s16, %s2787_s7 }
 0x1f2   : > { %p2099_p13 = scmp.lt.u32.totalorder %s2097_s21, %s2093_s13  ;;  %p2101_p7 = scmp.lt.u32.totalorder %s2093_s13, %s2624_s16 }
 0x1f3   : > { %p2095_p9 = pnand %p2094_p4, %p2810_p2 }
 0x1f4   : > { %p2100_p5 = por %p2099_p13, %p2098_p11 }
 0x1f5   : > { %p2096_p8 = pneg %p2095_p9 }
 0x1f6   : > { %p2102_p12 = por %p2101_p7, %p2100_p5 }
 0x1f8   : > { %p2103_p0 = pnand %p2102_p12, %p2096_p8 }
 0x1fa   : > { %2106 = shalt.err (!%p2103_p0)
}
 0x1fb   : > { %1769 = dma.vmem_to_hbm [thread:$0]  (%p2810_p2), %s1433_s17, 128, %s2624_s16, %s2595_s15   ;;  %v1134_v40 = vsub.s32 0, %v2500_v46  ;;  %v1130_v41 = vld [vmem:[%s2784_s4] sm:$0x3]  ;;  %v1138_v42 = vsub.s32 1, %v2500_v46 }
 0x1fc   : > { %s2812_s15 = sshll.u32 %s2442_s10, 8  ;;  %s1691_s12 = sshll.u32 %s2189_s27, 12 }
 0x1fd   : > { %v2650_v43 = vrot.slane %v1130_v41, %v1134_v40  ;;  %v2652_v44 = vrot.slane %v1130_v41, %v1138_v42  ;;  %s2658_s14 = scalar_lea.vmem [#allocation9], %s2812_s15  ;;  %s2723_s30 = scalar_lea.hbm %s2785_s5, %s1691_s12 }
 0x1fe   : > { %s1398_s16 = sshll.u32 %s2658_s14, 4  ;;  %s1374_s27 = scalar_lea.sflag [#allocation5], %s2442_s10  ;;  %s2725_s16 = int_to_ptr.vmem [resolvable:$true] %s1398_s16 }
 0x1ff   : > { %s2107_s13 = scalar_lea.vmem %s2725_s16, 4096  ;;  %s2213_s9 = smov [#allocation9]  }
 0x200   : > { %p2108_p1 = scmp.ne.s32.totalorder %s2725_s16, %s2107_s13  ;;  %s2111_s11 = sshll.u32 %s2213_s9, 4  ;;  %s2112_s11 = int_to_ptr.vmem [resolvable:$false] %s2111_s11 }
 0x201   : > { %s2113_s21 = scalar_lea.vmem %s2112_s11, 8192  ;;  %p2114_p3 = scmp.lt.s32.totalorder %s2725_s16, %s2112_s11 }
 0x202   : > { %p2109_p6 = pnand %p2108_p1, %p2810_p2  ;;  %p2115_p4 = scmp.lt.s32.totalorder %s2113_s21, %s2107_s13 }
 0x204   : > { %p2110_p10 = pneg %p2109_p6  ;;  %p2116_p9 = por %p2115_p4, %p2114_p3 }
 0x206   : > { %p2117_p8 = pnand %p2116_p9, %p2110_p10 }
 0x263   : > { %v1047_v45 = vpop.f32.mrb[0].mxu1 }
 0x264   : > { %v1142_v47 = vadd.f32 %v2650_v43, %v1047_v45  ;;  %v1049_v48 = vpop.f32.mrb[1].mxu1 }
 0x265   : > { %v1143_v49 = vadd.f32 %v2652_v44, %v1049_v48  ;;  %v1051_v50 = vpop.f32.mrb[2].mxu1 }
 0x266   : > { %1341 = vst [vmem:[%s2658_s14] sm:$0xff] %v1142_v47  ;;  %v1144_v46 = vadd.f32 %v2650_v43, %v1051_v50  ;;  %v1053_v51 = vpop.f32.mrb[3].mxu1 }
 0x267   : > { %1342 = vst [vmem:[%s2658_s14 + $0x8] sm:$0xff] %v1143_v49  ;;  %v1145_v52 = vadd.f32 %v2652_v44, %v1053_v51 }
 0x268   : > { %1343 = vst [vmem:[%s2658_s14 + $0x10] sm:$0xff] %v1144_v46 }
 0x269   : > { %1344 = vst [vmem:[%s2658_s14 + $0x18] sm:$0xff] %v1145_v52 }
 0x26b   : > { %v1057_v53 = vpop.f32.mrb[4].mxu1 }
 0x26c   : > { %v1146_v55 = vadd.f32 %v2650_v43, %v1057_v53  ;;  %v1059_v56 = vpop.f32.mrb[5].mxu1 }
 0x26d   : > { %v1147_v57 = vadd.f32 %v2652_v44, %v1059_v56  ;;  %v1061_v58 = vpop.f32.mrb[6].mxu1 }
 0x26e   : > { %1345 = vst [vmem:[%s2658_s14 + $0x20] sm:$0xff] %v1146_v55  ;;  %v1148_v59 = vadd.f32 %v2650_v43, %v1061_v58  ;;  %v1063_v60 = vpop.f32.mrb[7].mxu1 }
 0x26f   : > { %1346 = vst [vmem:[%s2658_s14 + $0x28] sm:$0xff] %v1147_v57  ;;  %v1149_v18 = vadd.f32 %v2652_v44, %v1063_v60 }
 0x270   : > { %1347 = vst [vmem:[%s2658_s14 + $0x30] sm:$0xff] %v1148_v59 }
 0x271   : > { %1348 = vst [vmem:[%s2658_s14 + $0x38] sm:$0xff] %v1149_v18 }
 0x273   : > { %v1067_v61 = vpop.f32.mrb[8].mxu1 }
 0x274   : > { %v1150_v62 = vadd.f32 %v2650_v43, %v1067_v61  ;;  %v1069_v63 = vpop.f32.mrb[9].mxu1 }
 0x275   : > { %v1151_v0 = vadd.f32 %v2652_v44, %v1069_v63  ;;  %v1071_v1 = vpop.f32.mrb[10].mxu1 }
 0x276   : > { %1349 = vst [vmem:[%s2658_s14 + $0x40] sm:$0xff] %v1150_v62  ;;  %v1152_v2 = vadd.f32 %v2650_v43, %v1071_v1  ;;  %v1073_v3 = vpop.f32.mrb[11].mxu1 }
 0x277   : > { %1350 = vst [vmem:[%s2658_s14 + $0x48] sm:$0xff] %v1151_v0  ;;  %v1153_v4 = vadd.f32 %v2652_v44, %v1073_v3 }
 0x278   : > { %1351 = vst [vmem:[%s2658_s14 + $0x50] sm:$0xff] %v1152_v2 }
 0x279   : > { %1352 = vst [vmem:[%s2658_s14 + $0x58] sm:$0xff] %v1153_v4 }
 0x27b   : > { %v1077_v5 = vpop.f32.mrb[12].mxu1 }
 0x27c   : > { %v1154_v6 = vadd.f32 %v2650_v43, %v1077_v5  ;;  %v1079_v7 = vpop.f32.mrb[13].mxu1 }
 0x27d   : > { %v1155_v8 = vadd.f32 %v2652_v44, %v1079_v7  ;;  %v1081_v9 = vpop.f32.mrb[14].mxu1 }
 0x27e   : > { %1353 = vst [vmem:[%s2658_s14 + $0x60] sm:$0xff] %v1154_v6  ;;  %v1156_v10 = vadd.f32 %v2650_v43, %v1081_v9  ;;  %v1083_v11 = vpop.f32.mrb[15].mxu1 }
 0x27f   : > { %1354 = vst [vmem:[%s2658_s14 + $0x68] sm:$0xff] %v1155_v8  ;;  %v1157_v12 = vadd.f32 %v2652_v44, %v1083_v11 }
 0x280   : > { %1355 = vst [vmem:[%s2658_s14 + $0x70] sm:$0xff] %v1156_v10 }
 0x281   : > { %1356 = vst [vmem:[%s2658_s14 + $0x78] sm:$0xff] %v1157_v12 }
 0x283   : > { %v1087_v13 = vpop.f32.mrb[16].mxu1 }
 0x284   : > { %v1158_v14 = vadd.f32 %v2650_v43, %v1087_v13  ;;  %v1089_v15 = vpop.f32.mrb[17].mxu1 }
 0x285   : > { %v1159_v17 = vadd.f32 %v2652_v44, %v1089_v15  ;;  %v1091_v19 = vpop.f32.mrb[18].mxu1 }
 0x286   : > { %1357 = vst [vmem:[%s2658_s14 + $0x80] sm:$0xff] %v1158_v14  ;;  %v1160_v20 = vadd.f32 %v2650_v43, %v1091_v19  ;;  %v1093_v21 = vpop.f32.mrb[19].mxu1 }
 0x287   : > { %1358 = vst [vmem:[%s2658_s14 + $0x88] sm:$0xff] %v1159_v17  ;;  %v1161_v22 = vadd.f32 %v2652_v44, %v1093_v21 }
 0x288   : > { %1359 = vst [vmem:[%s2658_s14 + $0x90] sm:$0xff] %v1160_v20 }
 0x289   : > { %1360 = vst [vmem:[%s2658_s14 + $0x98] sm:$0xff] %v1161_v22 }
 0x28b   : > { %v1097_v23 = vpop.f32.mrb[20].mxu1 }
 0x28c   : > { %v1162_v24 = vadd.f32 %v2650_v43, %v1097_v23  ;;  %v1099_v25 = vpop.f32.mrb[21].mxu1 }
 0x28d   : > { %v1163_v26 = vadd.f32 %v2652_v44, %v1099_v25  ;;  %v1101_v27 = vpop.f32.mrb[22].mxu1 }
 0x28e   : > { %1361 = vst [vmem:[%s2658_s14 + $0xa0] sm:$0xff] %v1162_v24  ;;  %v1164_v28 = vadd.f32 %v2650_v43, %v1101_v27  ;;  %v1103_v29 = vpop.f32.mrb[23].mxu1 }
 0x28f   : > { %1362 = vst [vmem:[%s2658_s14 + $0xa8] sm:$0xff] %v1163_v26  ;;  %v1165_v30 = vadd.f32 %v2652_v44, %v1103_v29 }
 0x290   : > { %1363 = vst [vmem:[%s2658_s14 + $0xb0] sm:$0xff] %v1164_v28 }
 0x291   : > { %1364 = vst [vmem:[%s2658_s14 + $0xb8] sm:$0xff] %v1165_v30 }
 0x293   : > { %v1107_v31 = vpop.f32.mrb[24].mxu1 }
 0x294   : > { %v1166_v32 = vadd.f32 %v2650_v43, %v1107_v31  ;;  %v1109_v33 = vpop.f32.mrb[25].mxu1 }
 0x295   : > { %v1167_v34 = vadd.f32 %v2652_v44, %v1109_v33  ;;  %v1111_v35 = vpop.f32.mrb[26].mxu1 }
 0x296   : > { %1365 = vst [vmem:[%s2658_s14 + $0xc0] sm:$0xff] %v1166_v32  ;;  %v1168_v54 = vadd.f32 %v2650_v43, %v1111_v35  ;;  %v1113_v36 = vpop.f32.mrb[27].mxu1 }
 0x297   : > { %1366 = vst [vmem:[%s2658_s14 + $0xc8] sm:$0xff] %v1167_v34  ;;  %v1169_v16 = vadd.f32 %v2652_v44, %v1113_v36 }
 0x298   : > { %1367 = vst [vmem:[%s2658_s14 + $0xd0] sm:$0xff] %v1168_v54 }
 0x299   : > { %1368 = vst [vmem:[%s2658_s14 + $0xd8] sm:$0xff] %v1169_v16 }
 0x29b   : > { %v1117_v37 = vpop.f32.mrb[28].mxu1 }
 0x29c   : > { %v1170_v38 = vadd.f32 %v2650_v43, %v1117_v37  ;;  %v1119_v39 = vpop.f32.mrb[29].mxu1 }
 0x29d   : > { %v1171_v40 = vadd.f32 %v2652_v44, %v1119_v39  ;;  %v1121_v41 = vpop.f32.mrb[30].mxu1 }
 0x29e   : > { %1369 = vst [vmem:[%s2658_s14 + $0xe0] sm:$0xff] %v1170_v38  ;;  %v1172_v42 = vadd.f32 %v2650_v43, %v1121_v41  ;;  %v1123_v45 = vpop.f32.mrb[31].mxu1 }
 0x29f   : > { %1370 = vst [vmem:[%s2658_s14 + $0xe8] sm:$0xff] %v1171_v40  ;;  %v1173_v47 = vadd.f32 %v2652_v44, %v1123_v45 }
 0x2a0   : > { %1371 = vst [vmem:[%s2658_s14 + $0xf0] sm:$0xff] %v1172_v42 }
 0x2a1   : > { %1372 = vst [vmem:[%s2658_s14 + $0xf8] sm:$0xff] %v1173_v47 }
 0x2a2   : > { %2120 = shalt.err (!%p2117_p8)
}
 0x2a3   : > { %s2121_s8 = scalar_lea.hbm %s2723_s30, 4096  ;;  %s2125_s19 = scalar_lea.hbm %s2785_s5, 8192 }
 0x2a4   : > { %p2122_p11 = scmp.ne.s32.totalorder %s2723_s30, %s2121_s8  ;;  %p2126_p7 = scmp.lt.u32.totalorder %s2723_s30, %s2785_s5 }
 0x2a5   : > { %p2127_p12 = scmp.lt.u32.totalorder %s2125_s19, %s2121_s8  ;;  %p2129_p1 = scmp.lt.u32.totalorder %s2121_s8, %s2723_s30 }
 0x2a6   : > { %p2123_p13 = pnand %p2122_p11, %p2810_p2 }
 0x2a7   : > { %p2128_p0 = por %p2127_p12, %p2126_p7 }
 0x2a8   : > { %p2124_p5 = pneg %p2123_p13 }
 0x2a9   : > { %p2130_p6 = por %p2129_p1, %p2128_p0 }
 0x2ab   : > { %p2131_p10 = pnand %p2130_p6, %p2124_p5 }
 0x2ad   : > { %2134 = shalt.err (!%p2131_p10)
}
 0x2ae   : > { %s2214_s12 = smov 256   ;;  %s2215_s17 = smov 16  }
 0x2af   : > { %1767 = dma.vmem_to_hbm [thread:$0]  (%p2810_p2), %s2725_s16, 4096, %s2723_s30, %s1374_s27, %s2214_s12, %s2214_s12, %s2215_s17  }
 0x2b0 PF: > { %s2813_s22 = sld [smem:[#allocation17_spill]]  ;;  %s1444_s13 = sand.u32 1, %s2177_s24  }
 0x2b1   : > { %p2815_p4 = scmp.ge.s32.totalorder %s2197_s29, 2  ;;  %s1445_s9 = scalar_lea.sflag [#allocation5], %s1444_s13 }
 0x2b6   : > { %p2814_p3 = scmp.ne.s32.totalorder %s2813_s22, 0 }
 0x2b8   : > { %p1785_p9 = pnand %p2815_p4, %p2814_p3 }
 0x2ba   : > { %2168 = dma.done.wait (!%p1785_p9), %s1445_s9, 4096  }
 0x2bb   : > { %2170 = vsyncadd (!%p1785_p9), %s1445_s9, 4294963200  ;;  %s2816_s11 = sadd.s32 4294967294, %s2197_s29  }
 0x2bc   : > { %s1453_s21 = sand.u32 1, %s2816_s11  }
 0x2bd   : > { %s1454_s8 = scalar_lea.sflag [#allocation11], %s1453_s21 }
 0x2be   : > { %2172 = dma.done.wait (!%p1785_p9), %s1454_s8, 2176  }
 0x2bf   : > { %2174 = vsyncadd (!%p1785_p9), %s1454_s8, 4294965120  ;;  %s28_s29 = sadd.s32 1, %s2197_s29   ;;  %s2817_s24 = smov %s2181_s25 }
 0x2c0   : > { %p25_p2 = scmp.ge.s32.totalorder %s28_s29, 4   ;;  %s2818_s25 = smov %s2185_s26 }
 0x2c1   : > { %s2819_s26 = smov %s2396_s23  ;;  %s2820_s27 = smov %s2193_s28 }
 0x2c2   : > { %s2821_s28 = smov %s2823_s18  ;;  %27 = sbr.rel (!%p25_p2) target bundleno = 12 (0xc), region = 142 }
 0x2c9   :  { %1468 = vsyncpa [#allocation4], 1 }
 0x2ca   :  { %1470 = vsyncpa [#allocation4 + $0x1], 1 }
 0x2cb   :  { %1471 = vsyncpa [#allocation7], 1 }
 0x2cc   :  { %1472 = vsyncpa [#allocation5], 1 }
 0x2cd   :  { %1474 = vsyncpa [#allocation5 + $0x1], 1 }
 0x2ce   :  { %1475 = vsyncpa [#allocation11], 1 }
 0x2cf   :  { %1477 = vsyncpa [#allocation11 + $0x1], 1 }

</bundles_post_ra>
